<compile_context>
chip_gen: v5e
topology: v5e:2x2
jax: 0.10.0
libtpu: 0.0.40
codegen_flags: <defaults>
</compile_context>

<pallas_src>
import functools
import math
from dataclasses import dataclass
from typing import Optional

import jax
import jax.numpy as jnp
from jax import lax
from jax.experimental import pallas as pl
from jax.experimental.pallas import tpu as pltpu


@dataclass
class ModelArgs:
    dim: int = 384
    n_layers: int = 6
    n_heads: int = 6
    n_kv_heads: Optional[int] = 6
    vocab_size: int = 128256
    multiple_of: int = 32
    ffn_dim_multiplier: Optional[float] = None
    norm_eps: float = 1e-05
    max_batch_size: int = 16
    max_seq_len: int = 246
    train: bool = True


# ---------------------------------------------------------------------------
# Generic token-tiled matmul kernel:  (M, K) @ (K, N) -> (M, N)
# ---------------------------------------------------------------------------
def _matmul_kernel(x_ref, w_ref, o_ref):
    o_ref[...] = jnp.dot(
        x_ref[...], w_ref[...], preferred_element_type=jnp.float32
    ).astype(o_ref.dtype)


def matmul_pallas(x2d, w_t, *, tm_small_max: int = 256, tm_large: int = 512):
    """x2d: (M, K) activations, w_t: (K, N) weight (already transposed)."""
    M, K = x2d.shape
    K2, N = w_t.shape
    assert K == K2

    if M <= tm_small_max:
        # Decode-sized M: single-ish step, but aim for >=2 grid steps when M
        # allows it (v7x has 2 TensorCores; a 1-step grid idles one of them).
        tgt = (M + 1) // 2 if M >= 16 else M
        tm = max(8, ((tgt + 7) // 8) * 8)
    else:
        tm = tm_large
        # Keep at least 2 grid steps so both v7x TensorCores get work.
        while tm > 256 and -(-M // tm) < 2:
            tm //= 2
    M_pad = -(-M // tm) * tm
    x_p = jnp.pad(x2d, ((0, M_pad - M), (0, 0))) if M_pad != M else x2d

    flops = int(2 * M_pad * K * N)
    bytes_accessed = int(4 * (M_pad * K + K * N + M_pad * N))

    out = pl.pallas_call(
        _matmul_kernel,
        out_shape=jax.ShapeDtypeStruct((M_pad, N), x2d.dtype),
        grid_spec=pltpu.PrefetchScalarGridSpec(
            num_scalar_prefetch=0,
            grid=(M_pad // tm,),
            in_specs=[
                pl.BlockSpec((tm, K), lambda i: (i, 0)),
                pl.BlockSpec((K, N), lambda i: (0, 0)),  # constant block, no re-DMA
            ],
            out_specs=pl.BlockSpec((tm, N), lambda i: (i, 0)),
        ),
        compiler_params=pltpu.CompilerParams(
            dimension_semantics=("parallel",),
        ),
        cost_estimate=pl.CostEstimate(
            flops=flops, transcendentals=0, bytes_accessed=bytes_accessed
        ),
    )(x_p, w_t)
    return out[:M] if M_pad != M else out


# ---------------------------------------------------------------------------
# Attention core kernel: one batch element per grid step, all heads inside.
# Input is the fused QKV activation block (S, (H + 2*Hkv)*D); q/k columns are
# pre-permuted per head to [evens | odds] so interleaved RoPE = rotate-half.
# Output is lane-dense (S, H*D).
# ---------------------------------------------------------------------------
def _attention_kernel(qkv_ref, cos_ref, sin_ref, o_ref, *,
                      n_heads, n_kv_heads, head_dim, scale):
    S = qkv_ref.shape[0]
    D = head_dim
    hd2 = D // 2
    qd = n_heads * D
    kvd = n_kv_heads * D
    n_rep = n_heads // n_kv_heads

    cos_f = cos_ref[...]      # (S, D)  = [cos | cos]
    sin_f = sin_ref[...]      # (S, D)  = [-sin | sin]

    # Causal mask, built once (hoisted out of the head loop).
    row = lax.broadcasted_iota(jnp.int32, (S, S), 0)
    col = lax.broadcasted_iota(jnp.int32, (S, S), 1)
    causal = col <= row

    def rope(t):              # t: (S, D) in [evens | odds] layout
        rot = jnp.concatenate([t[:, hd2:], t[:, :hd2]], axis=1)
        return t * cos_f + rot * sin_f

    # RoPE the KV heads once (shared across n_rep query heads).
    k_rot = [rope(qkv_ref[:, qd + hk * D: qd + (hk + 1) * D])
             for hk in range(n_kv_heads)]
    v_heads = [qkv_ref[:, qd + kvd + hk * D: qd + kvd + (hk + 1) * D]
               for hk in range(n_kv_heads)]

    outs = []
    for h in range(n_heads):                       # static unroll over heads
        hk = h // n_rep                            # GQA: share KV head
        qr = rope(qkv_ref[:, h * D:(h + 1) * D])   # (S, D)
        # q @ k^T without materializing a transpose: contract dim 1 of both.
        s = lax.dot_general(qr, k_rot[hk], (((1,), (1,)), ((), ())),
                            preferred_element_type=jnp.float32) * scale
        s = jnp.where(causal, s, -jnp.inf)
        m = jnp.max(s, axis=-1, keepdims=True)
        p = jnp.exp(s - m)
        denom = jnp.sum(p, axis=-1, keepdims=True)
        inv = pl.reciprocal(denom, approx=True)    # EUP slot, then multiply
        outs.append(
            jnp.dot(p, v_heads[hk], preferred_element_type=jnp.float32) * inv)

    # Single lane-dense store: (S, H*D), H*D multiple of 128.
    o_ref[...] = jnp.concatenate(outs, axis=-1).astype(o_ref.dtype)


def attention_pallas(qkv, cos_f, sin_f, *, n_heads, n_kv_heads, head_dim, scale):
    """qkv: (B, S, (H + 2*Hkv)*D); cos_f, sin_f: (S, D). Returns (B, S, H*D)."""
    B, S, C = qkv.shape
    qd = n_heads * head_dim
    kernel = functools.partial(_attention_kernel, n_heads=n_heads,
                               n_kv_heads=n_kv_heads, head_dim=head_dim,
                               scale=scale)

    flops = int(4 * B * n_heads * S * S * head_dim)      # QK^T + PV
    transcendentals = int(B * n_heads * S * S)            # exp
    # HBM traffic only; (S, S) score matrices never leave VMEM.
    bytes_accessed = int(4 * (B * S * C + 2 * S * head_dim + B * S * qd))

    return pl.pallas_call(
        kernel,
        out_shape=jax.ShapeDtypeStruct((B, S, qd), qkv.dtype),
        grid_spec=pltpu.PrefetchScalarGridSpec(
            num_scalar_prefetch=0,
            grid=(B,),
            in_specs=[
                # Leading batch dim squeezed away (size-1 block): kernel sees 2-D refs.
                pl.BlockSpec((None, S, C), lambda b: (b, 0, 0)),
                pl.BlockSpec((S, head_dim), lambda b: (0, 0)),
                pl.BlockSpec((S, head_dim), lambda b: (0, 0)),
            ],
            out_specs=pl.BlockSpec((None, S, qd), lambda b: (b, 0, 0)),
        ),
        compiler_params=pltpu.CompilerParams(
            dimension_semantics=("parallel",),
        ),
        cost_estimate=pl.CostEstimate(
            flops=flops,
            transcendentals=transcendentals,
            bytes_accessed=bytes_accessed,
        ),
    )(qkv, cos_f, sin_f)


# ---------------------------------------------------------------------------
# One-time parameter precompute + forward (training path: no KV cache).
# ---------------------------------------------------------------------------
def _interleave_to_half_perm(n_heads: int, head_dim: int):
    """Per head: reorder [0,1,2,...,D-1] -> [0,2,4,...,D-2, 1,3,...,D-1]."""
    perm = []
    for h in range(n_heads):
        base = h * head_dim
        perm += [base + 2 * i for i in range(head_dim // 2)]
        perm += [base + 2 * i + 1 for i in range(head_dim // 2)]
    return jnp.asarray(perm, dtype=jnp.int32)


def precompute_attention_params(wq, wk, wv, wo, cos, sin, *, n_heads,
                                n_kv_heads, head_dim):
    """Done once at init: fold RoPE column permutation into Wq/Wk, fuse QKV."""
    perm_q = _interleave_to_half_perm(n_heads, head_dim)
    perm_k = _interleave_to_half_perm(n_kv_heads, head_dim)
    wqkv_t = jnp.concatenate([wq.T[:, perm_q], wk.T[:, perm_k], wv.T], axis=1)
    wo_t = wo.T
    cos_f = jnp.concatenate([cos, cos], axis=-1)     # (S, D)
    sin_f = jnp.concatenate([-sin, sin], axis=-1)    # (S, D), sign baked in
    return {"wqkv_t": wqkv_t, "wo_t": wo_t, "cos_f": cos_f, "sin_f": sin_f}


def self_attention_pallas(x, params, *, n_heads, n_kv_heads, head_dim):
    """x: (B, S, dim); params from precompute_attention_params."""
    B, S, dim = x.shape
    qd = n_heads * head_dim

    # Fused QKV projection (one GEMM), kept in (B, S, (H+2*Hkv)*D) layout.
    qkv = matmul_pallas(x.reshape(B * S, dim), params["wqkv_t"])
    qkv = qkv.reshape(B, S, -1)

    scale = 1.0 / math.sqrt(head_dim)
    attn = attention_pallas(qkv, params["cos_f"], params["sin_f"],
                            n_heads=n_heads, n_kv_heads=n_kv_heads,
                            head_dim=head_dim, scale=scale)   # (B, S, H*D)

    out = matmul_pallas(attn.reshape(B * S, qd), params["wo_t"])
    return out.reshape(B, S, dim)


# ---------------------------------------------------------------------------
# Pure-JAX reference, mirroring the PyTorch module exactly (interleaved RoPE).
# ---------------------------------------------------------------------------
def self_attention_reference(x, wq, wk, wv, wo, cos, sin, *, n_heads,
                             n_kv_heads, head_dim):
    B, S, dim = x.shape
    n_rep = n_heads // n_kv_heads
    xq = (x @ wq.T).reshape(B, S, n_heads, head_dim)
    xk = (x @ wk.T).reshape(B, S, n_kv_heads, head_dim)
    xv = (x @ wv.T).reshape(B, S, n_kv_heads, head_dim)

    def rope_interleaved(t):
        t2 = t.reshape(*t.shape[:-1], head_dim // 2, 2)
        tr, ti = t2[..., 0], t2[..., 1]
        c = cos[None, :, None, :]
        s_ = sin[None, :, None, :]
        o_r = tr * c - ti * s_
        o_i = tr * s_ + ti * c
        return jnp.stack([o_r, o_i], axis=-1).reshape(t.shape)

    xq = rope_interleaved(xq)
    xk = rope_interleaved(xk)
    if n_rep > 1:
        xk = jnp.repeat(xk, n_rep, axis=2)
        xv = jnp.repeat(xv, n_rep, axis=2)
    xq = xq.transpose(0, 2, 1, 3)
    xk = xk.transpose(0, 2, 1, 3)
    xv = xv.transpose(0, 2, 1, 3)
    scores = jnp.einsum("bhqd,bhkd->bhqk", xq, xk) / math.sqrt(head_dim)
    mask = jnp.triu(jnp.ones((S, S), dtype=bool), k=1)
    scores = jnp.where(mask[None, None], -jnp.inf, scores)
    p = jax.nn.softmax(scores, axis=-1)
    out = jnp.einsum("bhqk,bhkd->bhqd", p, xv)
    out = out.transpose(0, 2, 1, 3).reshape(B, S, n_heads * head_dim)
    return out @ wo.T


# ---------------------------------------------------------------------------
# Test harness
# ---------------------------------------------------------------------------
def _run_case(key, *, B, S, dim, n_heads, n_kv_heads, label):
    D = dim // n_heads
    kx, kq, kk, kv, ko = jax.random.split(key, 5)
    x = jax.random.normal(kx, (B, S, dim), jnp.float32)
    bound_in = 1.0 / math.sqrt(dim)
    bound_o = 1.0 / math.sqrt(n_heads * D)
    wq = jax.random.uniform(kq, (n_heads * D, dim), jnp.float32, -bound_in, bound_in)
    wk = jax.random.uniform(kk, (n_kv_heads * D, dim), jnp.float32, -bound_in, bound_in)
    wv = jax.random.uniform(kv, (n_kv_heads * D, dim), jnp.float32, -bound_in, bound_in)
    wo = jax.random.uniform(ko, (dim, n_heads * D), jnp.float32, -bound_o, bound_o)

    # RoPE frequency tables (theta = 10000), equivalent to torch.polar tables.
    theta = 10000.0
    inv_freq = 1.0 / (theta ** (jnp.arange(0, D, 2, dtype=jnp.float32) / D))
    pos = jnp.arange(S, dtype=jnp.float32)
    angles = pos[:, None] * inv_freq[None, :]       # (S, D/2)
    cos, sin = jnp.cos(angles), jnp.sin(angles)

    params = precompute_attention_params(wq, wk, wv, wo, cos, sin,
                                         n_heads=n_heads,
                                         n_kv_heads=n_kv_heads, head_dim=D)
    out = self_attention_pallas(x, params, n_heads=n_heads,
                                n_kv_heads=n_kv_heads, head_dim=D)
    out = jax.block_until_ready(out)

    ref = self_attention_reference(x, wq, wk, wv, wo, cos, sin,
                                   n_heads=n_heads, n_kv_heads=n_kv_heads,
                                   head_dim=D)
    assert out.shape == (B, S, dim), f"bad shape ({label})"
    assert jnp.allclose(out, ref, atol=2e-3, rtol=2e-3), \
        f"mismatch vs reference ({label})"


if __name__ == "__main__":
    key = jax.random.PRNGKey(0)
    k1, k2 = jax.random.split(key)
    # MHA case (n_rep == 1), decode-sized token count (small-M matmul path).
    _run_case(k1, B=2, S=8, dim=384, n_heads=6, n_kv_heads=6, label="mha")
    # GQA case (n_rep == 2) with B*S > 256 to exercise the tiled-GEMM path.
    _run_case(k2, B=2, S=160, dim=384, n_heads=6, n_kv_heads=3, label="gqa")
    print("KERNEL_OK")
</pallas_src>

<mosaic_0001>
module attributes {stable_mosaic.version = 11 : i64} {
  func.func @_matmul_kernel(%arg0: i32, %arg1: memref<8x384xf32, #tpu.memory_space<vmem>>, %arg2: memref<384x1152xf32, #tpu.memory_space<vmem>>, %arg3: memref<8x1152xf32, #tpu.memory_space<vmem>>) attributes {dimension_semantics = [#tpu.dimension_semantics<parallel>], iteration_bounds = array<i64: 2>, scalar_prefetch = 0 : i64, scratch_operands = 0 : i64, tpu.core_type = #tpu.core_type<tc>, window_params = [{transform_indices = @transform_0, window_bounds = array<i64: 8, 384>}, {pipeline_mode = #tpu.pipeline_mode<synchronous>, transform_indices = @transform_1, window_bounds = array<i64: 384, 1152>}, {transform_indices = @transform_2, window_bounds = array<i64: 8, 1152>}]} {
    %c0 = arith.constant 0 : index
    %c0_0 = arith.constant 0 : index
    %0 = vector.load %arg1[%c0, %c0_0] : memref<8x384xf32, #tpu.memory_space<vmem>>, vector<8x384xf32>
    %c0_1 = arith.constant 0 : index
    %c0_2 = arith.constant 0 : index
    %1 = vector.load %arg2[%c0_1, %c0_2] : memref<384x1152xf32, #tpu.memory_space<vmem>>, vector<384x1152xf32>
    %cst = arith.constant dense<0.000000e+00> : vector<8x1152xf32>
    %2 = tpu.matmul %0, %1, %cst {dimension_numbers = #tpu.dot_dimension_numbers<[1], [0], [0], [1], [0, 0, 1, 1], [], []>} : vector<8x384xf32>, vector<384x1152xf32>, vector<8x1152xf32> -> vector<8x1152xf32>
    %c0_3 = arith.constant 0 : index
    %c0_4 = arith.constant 0 : index
    %3 = vector.load %arg3[%c0_3, %c0_4] : memref<8x1152xf32, #tpu.memory_space<vmem>>, vector<8x1152xf32>
    tpu.vector_store %arg3[%c0_3, %c0_4], %2 {strides = array<i32>} : memref<8x1152xf32, #tpu.memory_space<vmem>>, vector<8x1152xf32>,
    return
  }
  func.func @transform_0(%arg0: i32) -> (i32, i32) {
    %c0_i32 = arith.constant 0 : i32
    %c0_i32_0 = arith.constant 0 : i32
    return %arg0, %c0_i32 : i32, i32
  }
  func.func @transform_1(%arg0: i32) -> (i32, i32) {
    %c0_i32 = arith.constant 0 : i32
    %c0_i32_0 = arith.constant 0 : i32
    %c0_i32_1 = arith.constant 0 : i32
    return %c0_i32, %c0_i32_0 : i32, i32
  }
  func.func @transform_2(%arg0: i32) -> (i32, i32) {
    %c0_i32 = arith.constant 0 : i32
    %c0_i32_0 = arith.constant 0 : i32
    return %arg0, %c0_i32 : i32, i32
  }
}

</mosaic_0001>

<bundles_post_ra>
// kernel: tpu_custom_call.1
= control target key start
LH: loop header
LB: loop body
LE: loop exit
PB: predicated region body
PF: predicated region fallthrough
CT: control target
= control target key end

     0   :  { %7 = vsyncpa [#allocation3], 0  ;;  %s1683_s0 = inlined_call_operand.hbm [shape: f32[16,384], index: 0, kind: input, shape index: {}]   ;;  %s1684_s1 = inlined_call_operand.hbm [shape: f32[384,1152], index: 1, kind: input, shape index: {}]   ;;  %s1685_s2 = inlined_call_operand.hbm [shape: f32[16,1152], index: 2, kind: output, shape index: {}]  }
   0x1   :  { %9 = vsyncpa [#allocation3 + $0x1], 0 }
   0x2   :  { %10 = vsyncpa [#allocation6], 0 }
   0x3   :  { %11 = vsyncpa [#allocation4], 0 }
   0x4   :  { %13 = vsyncpa [#allocation4 + $0x1], 0  ;;  %s1487_s9 = smov 0   ;;  %s1489_s10 = smov 0  }
   0x5   :  { %s1491_s11 = smov 0   ;;  %s1493_s12 = smov 0  }
   0x6 LB: > { %s108_s15 = sshll.u32 %s1684_s1, 4  ;;  %s1511_s16 = sadd.s32 4294967295, %s1467_s12   ;;  %s1467_s12 = sphi %s1493_s12, %s1695_s12   ;;  %s1463_s11 = sphi %s1491_s11, %s1694_s11   ;;  %s1459_s10 = sphi %s1489_s10, %s1693_s10   ;;  %s1455_s9 = sphi %s1487_s9, %s1692_s9   ;;  %s109_s15 = int_to_ptr.hbm [resolvable:$true] %s108_s15 }
   0x7   : > { %p1261_p0 = scmp.ge.s32.totalorder %s1467_s12, 1  ;;  %p40_p1 = scmp.eq.s32.totalorder %s1511_s16, 0 }
   0x8   : > { %p97_p2 = scmp.lt.s32.totalorder %s1467_s12, 3  ;;  %s1469_s18 = smov [#allocation5]  }
   0x9   : > { %s110_s19 = sshll.u32 %s1469_s18, 4  ;;  %s1470_s20 = smov 1152   ;;  %s111_s19 = int_to_ptr.vmem [resolvable:$true] %s110_s19 }
   0xa   : > { %p1516_p3 = pnand %p1261_p0, %p97_p2  ;;  %s1471_s21 = smov 72  }
   0xb   : > { %s1260_s22 = sadd.s32 4294967294, %s1467_s12   ;;  %s1527_s23 = sadd.s32 1, %s1467_s12  }
   0xc   : > { %p1283_p4 = pneg %p1516_p3  ;;  %s26_s24 = sadd.s32 1, %s1463_s11 }
   0xd   : > { %s23_s25 = ssub.s32 %s1467_s12, %s1527_s23  ;;  %p33_p7 = scmp.ne.s32.totalorder %s1463_s11, %s1459_s10 }
   0xe   : > { %p1284_p6 = pnand %p1283_p4, %p40_p1  ;;  %p24_p8 = scmp.eq.s32.totalorder %s23_s25, 0 }
   0xf   : > { %p34_p9 = scmp.eq.s32.totalorder %s1467_s12, 0  ;;  %p39_p10 = scmp.ne.s32.totalorder %s1459_s10, %s1455_s9 }
  0x10   : > { %1286 = dma.hbm_to_vmem [thread:$0]  (!%p1284_p6), %s109_s15, 55296, %s111_s19, [#allocation6], %s1470_s20, %s1470_s20, %s1471_s21  }
  0x11   : > { %p84_p11 = scmp.eq.s32.totalorder %s1511_s16, 1  ;;  %p35_p12 = por %p34_p9, %p33_p7 }
  0x12   : > { %s1539_s26 = scalar_select %p24_p8, %s1463_s11, %s26_s24  }
  0x13   : > { %p1543_p13 = por %p40_p1, %p39_p10  ;;  %p1547_p0 = por %p84_p11, %p33_p7 }
  0x14   : > { %p90_p2 = scmp.eq.s32.totalorder %s1260_s22, 1  ;;  %p1296_p4 = scmp.lt.s32.totalorder %s1467_s12, 2 }
  0x15   : > { %s124_s29 = sand.u32 1, %s1463_s11   ;;  %s1271_s5 = smul.u32 24, %s1467_s12 }
  0x16   : > { %p1553_p6 = por %p90_p2, %p39_p10  ;;  %s1270_s3 = smul.u32 24, %s124_s29 }
  0x17   : > { %p1557_p8 = pnand %p1296_p4, %p35_p12  ;;  %s133_s8 = scalar_lea.hbm %s1683_s0, %s1271_s5 }
  0x18   : > { %s128_s13 = scalar_lea.vmem [#allocation2], %s1270_s3  ;;  %s135_s15 = sshll.u32 %s133_s8, 4  ;;  %s136_s15 = int_to_ptr.hbm [resolvable:$true] %s135_s15 }
  0x19   : > { %s137_s14 = sshll.u32 %s128_s13, 4  ;;  %s125_s18 = scalar_lea.sflag [#allocation3], %s124_s29  ;;  %s138_s14 = int_to_ptr.vmem [resolvable:$true] %s137_s14 }
  0x1a   : > { %s1367_s19 = sshra.s32 %s136_s15, 4  ;;  %p1371_p9 = pneg %p1557_p8  ;;  %s1368_s19 = int_to_ptr.hbm [resolvable:$true] %s1367_s19 }
  0x1b   : > { %s1369_s20 = scalar_lea.hbm %s1368_s19, 24  ;;  %s1374_s24 = scalar_lea.hbm %s1683_s0, 48 }
  0x1c   : > { %p1370_p7 = scmp.ne.s32.totalorder %s1368_s19, %s1369_s20  ;;  %p1375_p12 = scmp.lt.s32.totalorder %s1368_s19, %s1683_s0 }
  0x1d   : > { %p1376_p2 = scmp.lt.s32.totalorder %s1374_s24, %s1369_s20 }
  0x1e   : > { %p1372_p10 = pnand %p1371_p9, %p1370_p7 }
  0x1f   : > { %p1377_p4 = por %p1376_p2, %p1375_p12 }
  0x20   : > { %p1373_p11 = pneg %p1372_p10 }
  0x22   : > { %p1378_p5 = pnand %p1377_p4, %p1373_p11 }
  0x24   : > { %1381 = shalt.err (!%p1378_p5)
}
  0x25   : > { %1290 = dma.hbm_to_vmem [thread:$0]  (!%p1557_p8), %s136_s15, 384, %s138_s14, %s125_s18  }
  0x26   : > { %146 = sbr.rel (%p1516_p3) target bundleno = 413 (0x19d), region = 28  ;;  %s1578_s29 = sand.u32 (!%p1516_p3), 1, %s1459_s10  }
  0x27   : > { %s1272_s3 = smul.u32 (!%p1516_p3), 24, %s1578_s29  ;;  %s149_s6 = scalar_lea.sflag (!%p1516_p3), [#allocation3], %s1578_s29 }
  0x29   : > { %s1582_s7 = scalar_lea.vmem (!%p1516_p3), [#allocation2], %s1272_s3 }
  0x2b   : > { %1442 = dma.done.wait (%p1543_p13), %s149_s6, 384  }
  0x2c   : > { %1444 = vsyncadd (%p1543_p13), %s149_s6, 4294966912 }
  0x2d   : > { %1446 = dma.done.wait (%p40_p1), [#allocation6], 55296  }
  0x2e   : > { %1448 = vsyncadd (%p40_p1), [#allocation6], 4294912000  ;;  %v605_v0 = vld [vmem:[#allocation5 + $0xd38] sm:$0xff]  ;;  %v596_v1 = vld [vmem:[#allocation5 + $0xcf0] sm:$0xff]  ;;  %s1273_s17 = smul.u32 72, %s1578_s29  ;;  %s1164_s19 = scalar_lea.sflag [#allocation4], %s1578_s29 }
  0x2f   : > { %v317_v2 = vld [vmem:[#allocation5 + $0x438] sm:$0xff]  ;;  %654 = vmatpush.msra.mxu2 %v605_v0  ;;  %v308_v4 = vld [vmem:[#allocation5 + $0x3f0] sm:$0xff]  ;;  %v587_v5 = vld [vmem:[#allocation5 + $0xca8] sm:$0xff]  ;;  %s1274_s4 = smul.u32 72, %s1511_s16  ;;  %s1417_s24 = scalar_lea.hbm %s1685_s2, 144 }
  0x30   : > { %614 = vmatpush.msra.mxu0 %v317_v2  ;;  %v461_v3 = vld [vmem:[#allocation5 + $0x8b8] sm:$0xff]  ;;  %v452_v6 = vld [vmem:[#allocation5 + $0x870] sm:$0xff]  ;;  %v299_v7 = vld [vmem:[#allocation5 + $0x3a8] sm:$0xff]  ;;  %s1625_s27 = scalar_lea.vmem [#allocation7], %s1273_s17 }
  0x31   : > { %634 = vmatpush.msra.mxu1 %v461_v3  ;;  %655 = vmatpush.msra.mxu2 %v596_v1  ;;  %v443_v8 = vld [vmem:[#allocation5 + $0x828] sm:$0xff]  ;;  %v578_v9 = vld [vmem:[#allocation5 + $0xc60] sm:$0xff]  ;;  %v569_v12 = vld [vmem:[#allocation5 + $0xc18] sm:$0xff]  ;;  %s1175_s14 = scalar_lea.hbm %s1685_s2, %s1274_s4  ;;  %s1177_s15 = sshll.u32 %s1625_s27, 4  ;;  %s1178_s15 = int_to_ptr.vmem [resolvable:$true] %s1177_s15 }
  0x32   : > { %615 = vmatpush.msra.mxu0 %v308_v4  ;;  %v290_v10 = vld [vmem:[#allocation5 + $0x360] sm:$0xff]  ;;  %v281_v13 = vld [vmem:[#allocation5 + $0x318] sm:$0xff]  ;;  %v560_v15 = vld [vmem:[#allocation5 + $0xbd0] sm:$0xff]  ;;  %s1179_s18 = sshll.u32 %s1175_s14, 4  ;;  %s1180_s18 = int_to_ptr.hbm [resolvable:$true] %s1179_s18 }
  0x33   : > { %635 = vmatpush.msra.mxu1 %v452_v6  ;;  %656 = vmatpush.msra.mxu2 %v587_v5  ;;  %v434_v11 = vld [vmem:[#allocation5 + $0x7e0] sm:$0xff]  ;;  %v425_v14 = vld [vmem:[#allocation5 + $0x798] sm:$0xff]  ;;  %v272_v16 = vld [vmem:[#allocation5 + $0x2d0] sm:$0xff]  ;;  %s1411_s20 = sshra.s32 %s1180_s18, 4  ;;  %s1412_s20 = int_to_ptr.hbm [resolvable:$true] %s1411_s20 }
  0x34   : > { %616 = vmatpush.msra.mxu0 %v299_v7  ;;  %v416_v17 = vld [vmem:[#allocation5 + $0x750] sm:$0xff]  ;;  %v551_v18 = vld [vmem:[#allocation5 + $0xb88] sm:$0xff]  ;;  %v318_v20 = vld [vmem:[#allocation5 + $0x440] sm:$0xff]  ;;  %s1413_s16 = scalar_lea.hbm %s1412_s20, 72  ;;  %p1418_p13 = scmp.lt.s32.totalorder %s1412_s20, %s1685_s2 }
  0x35   : > { %636 = vmatpush.msra.mxu1 %v443_v8  ;;  %657 = vmatpush.msra.mxu2 %v578_v9  ;;  %v263_v19 = vld [vmem:[#allocation5 + $0x288] sm:$0xff]  ;;  %v542_v22 = vld [vmem:[#allocation5 + $0xb40] sm:$0xff]  ;;  %v309_v24 = vld [vmem:[#allocation5 + $0x3f8] sm:$0xff]  ;;  %p1414_p1 = scmp.ne.s32.totalorder %s1412_s20, %s1413_s16  ;;  %p1419_p8 = scmp.lt.s32.totalorder %s1417_s24, %s1413_s16 }
  0x36   : > { %617 = vmatpush.msra.mxu0 %v290_v10  ;;  %v407_v21 = vld [vmem:[#allocation5 + $0x708] sm:$0xff]  ;;  %v254_v23 = vld [vmem:[#allocation5 + $0x240] sm:$0xff]  ;;  %674 = vmatpush.msra.mxu3 %v318_v20  ;;  %v300_v26 = vld [vmem:[#allocation5 + $0x3b0] sm:$0xff] }
  0x37   : > { %637 = vmatpush.msra.mxu1 %v434_v11  ;;  %658 = vmatpush.msra.mxu2 %v569_v12  ;;  %v398_v25 = vld [vmem:[#allocation5 + $0x6c0] sm:$0xff]  ;;  %v533_v27 = vld [vmem:[#allocation5 + $0xaf8] sm:$0xff]  ;;  %v291_v30 = vld [vmem:[#allocation5 + $0x368] sm:$0xff]  ;;  %p1415_p3 = pnand %p1414_p1, %p1547_p0  ;;  %p1420_p7 = por %p1419_p8, %p1418_p13 }
  0x38   : > { %618 = vmatpush.msra.mxu0 %v281_v13  ;;  %v245_v28 = vld [vmem:[#allocation5 + $0x1f8] sm:$0xff]  ;;  %675 = vmatpush.msra.mxu3 %v309_v24  ;;  %v524_v31 = vld [vmem:[#allocation5 + $0xab0] sm:$0xff]  ;;  %v282_v34 = vld [vmem:[#allocation5 + $0x320] sm:$0xff] }
  0x39   : > { %638 = vmatpush.msra.mxu1 %v425_v14  ;;  %659 = vmatpush.msra.mxu2 %v560_v15  ;;  %v389_v29 = vld [vmem:[#allocation5 + $0x678] sm:$0xff]  ;;  %v236_v32 = vld [vmem:[#allocation5 + $0x1b0] sm:$0xff]  ;;  %v515_v35 = vld [vmem:[#allocation5 + $0xa68] sm:$0xff]  ;;  %p1416_p5 = pneg %p1415_p3 }
  0x3a   : > { %619 = vmatpush.msra.mxu0 %v272_v16  ;;  %676 = vmatpush.msra.mxu3 %v300_v26  ;;  %v380_v33 = vld [vmem:[#allocation5 + $0x630] sm:$0xff]  ;;  %v227_v36 = vld [vmem:[#allocation5 + $0x168] sm:$0xff]  ;;  %v273_v38 = vld [vmem:[#allocation5 + $0x2d8] sm:$0xff] }
  0x3b   : > { %639 = vmatpush.msra.mxu1 %v416_v17  ;;  %660 = vmatpush.msra.mxu2 %v551_v18  ;;  %v371_v37 = vld [vmem:[#allocation5 + $0x5e8] sm:$0xff]  ;;  %v506_v39 = vld [vmem:[#allocation5 + $0xa20] sm:$0xff]  ;;  %v264_v42 = vld [vmem:[#allocation5 + $0x290] sm:$0xff]  ;;  %p1421_p9 = pnand %p1420_p7, %p1416_p5 }
  0x3c   : > { %620 = vmatpush.msra.mxu0 %v263_v19  ;;  %677 = vmatpush.msra.mxu3 %v291_v30  ;;  %v218_v40 = vld [vmem:[#allocation5 + $0x120] sm:$0xff]  ;;  %v497_v43 = vld [vmem:[#allocation5 + $0x9d8] sm:$0xff]  ;;  %v255_v46 = vld [vmem:[#allocation5 + $0x248] sm:$0xff] }
  0x3d   : > { %640 = vmatpush.msra.mxu1 %v407_v21  ;;  %661 = vmatpush.msra.mxu2 %v542_v22  ;;  %v362_v41 = vld [vmem:[#allocation5 + $0x5a0] sm:$0xff]  ;;  %v209_v44 = vld [vmem:[#allocation5 + $0xd8] sm:$0xff]  ;;  %v488_v47 = vld [vmem:[#allocation5 + $0x990] sm:$0xff] }
  0x3e   : > { %621 = vmatpush.msra.mxu0 %v254_v23  ;;  %678 = vmatpush.msra.mxu3 %v282_v34  ;;  %v353_v45 = vld [vmem:[#allocation5 + $0x558] sm:$0xff]  ;;  %v200_v48 = vld [vmem:[#allocation5 + $0x90] sm:$0xff]  ;;  %v246_v50 = vld [vmem:[#allocation5 + $0x200] sm:$0xff] }
  0x3f   : > { %641 = vmatpush.msra.mxu1 %v398_v25  ;;  %662 = vmatpush.msra.mxu2 %v533_v27  ;;  %v344_v49 = vld [vmem:[#allocation5 + $0x510] sm:$0xff]  ;;  %v479_v51 = vld [vmem:[#allocation5 + $0x948] sm:$0xff]  ;;  %v237_v54 = vld [vmem:[#allocation5 + $0x1b8] sm:$0xff] }
  0x40   : > { %622 = vmatpush.msra.mxu0 %v245_v28  ;;  %679 = vmatpush.msra.mxu3 %v273_v38  ;;  %v191_v52 = vld [vmem:[#allocation5 + $0x48] sm:$0xff]  ;;  %v470_v55 = vld [vmem:[#allocation5 + $0x900] sm:$0xff]  ;;  %v228_v62 = vld [vmem:[#allocation5 + $0x170] sm:$0xff] }
  0x41   : > { %642 = vmatpush.msra.mxu1 %v389_v29  ;;  %663 = vmatpush.msra.mxu2 %v524_v31  ;;  %v335_v53 = vld [vmem:[#allocation5 + $0x4c8] sm:$0xff]  ;;  %v182_v56 = vld [vmem:[#allocation5] sm:$0xff]  ;;  %v453_v63 = vld [vmem:[#allocation5 + $0x878] sm:$0xff] }
  0x42   : > { %623 = vmatpush.msra.mxu0 %v236_v32  ;;  %680 = vmatpush.msra.mxu3 %v264_v42  ;;  %v319_v57 = vld [vmem:[#allocation5 + $0x448] sm:$0xff]  ;;  %v326_v58 = vld [vmem:[#allocation5 + $0x480] sm:$0xff]  ;;  %v597_v0 = vld [vmem:[#allocation5 + $0xcf8] sm:$0xff] }
  0x43   : > { %643 = vmatpush.msra.mxu1 %v380_v33  ;;  %664 = vmatpush.msra.mxu2 %v515_v35  ;;  %v462_v59 = vld [vmem:[#allocation5 + $0x8c0] sm:$0xff]  ;;  %v301_v1 = vld [vmem:[#allocation5 + $0x3b8] sm:$0xff]  ;;  %v219_v2 = vld [vmem:[#allocation5 + $0x128] sm:$0xff] }
  0x44   : > { %624 = vmatpush.msra.mxu0 %v227_v36  ;;  %681 = vmatpush.msra.mxu3 %v255_v46  ;;  %v606_v60 = vld [vmem:[#allocation5 + $0xd40] sm:$0xff]  ;;  %v444_v3 = vld [vmem:[#allocation5 + $0x830] sm:$0xff]  ;;  %v435_v7 = vld [vmem:[#allocation5 + $0x7e8] sm:$0xff] }
  0x45   : > { %644 = vmatpush.msra.mxu1 %v371_v37  ;;  %665 = vmatpush.msra.mxu2 %v506_v39  ;;  %v310_v61 = vld [vmem:[#allocation5 + $0x400] sm:$0xff]  ;;  %v588_v4 = vld [vmem:[#allocation5 + $0xcb0] sm:$0xff]  ;;  %v579_v8 = vld [vmem:[#allocation5 + $0xc68] sm:$0xff] }
  0x46   : > { %625 = vmatpush.msra.mxu0 %v218_v40  ;;  %682 = vmatpush.msra.mxu3 %v246_v50  ;;  %v292_v5 = vld [vmem:[#allocation5 + $0x370] sm:$0xff]  ;;  %v210_v6 = vld [vmem:[#allocation5 + $0xe0] sm:$0xff]  ;;  %v283_v9 = vld [vmem:[#allocation5 + $0x328] sm:$0xff] }
  0x47   : > { %645 = vmatpush.msra.mxu1 %v362_v41  ;;  %666 = vmatpush.msra.mxu2 %v497_v43  ;;  %v201_v10 = vld [vmem:[#allocation5 + $0x98] sm:$0xff]  ;;  %v426_v11 = vld [vmem:[#allocation5 + $0x7a0] sm:$0xff]  ;;  %v192_v14 = vld [vmem:[#allocation5 + $0x50] sm:$0xff] }
  0x48   : > { %626 = vmatpush.msra.mxu0 %v209_v44  ;;  %683 = vmatpush.msra.mxu3 %v237_v54  ;;  %v570_v12 = vld [vmem:[#allocation5 + $0xc20] sm:$0xff]  ;;  %v417_v15 = vld [vmem:[#allocation5 + $0x758] sm:$0xff]  ;;  %v183_v18 = vld [vmem:[#allocation5 + $0x8] sm:$0xff] }
  0x49   : > { %646 = vmatpush.msra.mxu1 %v353_v45  ;;  %667 = vmatpush.msra.mxu2 %v488_v47  ;;  %v274_v13 = vld [vmem:[#allocation5 + $0x2e0] sm:$0xff]  ;;  %v561_v16 = vld [vmem:[#allocation5 + $0xbd8] sm:$0xff]  ;;  %v408_v19 = vld [vmem:[#allocation5 + $0x710] sm:$0xff] }
  0x4a   : > { %627 = vmatpush.msra.mxu0 %v200_v48  ;;  %684 = vmatpush.msra.mxu3 %v228_v62  ;;  %v265_v17 = vld [vmem:[#allocation5 + $0x298] sm:$0xff]  ;;  %v552_v20 = vld [vmem:[#allocation5 + $0xb90] sm:$0xff]  ;;  %v463_v22 = vld [vmem:[#allocation5 + $0x8c8] sm:$0xff] }
  0x4b   : > { %647 = vmatpush.msra.mxu1 %v344_v49  ;;  %668 = vmatpush.msra.mxu2 %v479_v51  ;;  %v256_v21 = vld [vmem:[#allocation5 + $0x250] sm:$0xff]  ;;  %v399_v23 = vld [vmem:[#allocation5 + $0x6c8] sm:$0xff]  ;;  %v454_v26 = vld [vmem:[#allocation5 + $0x880] sm:$0xff] }
  0x4c   : > { %628 = vmatpush.msra.mxu0 %v191_v52  ;;  %685 = vmatpush.msra.mxu3 %v219_v2  ;;  %v543_v24 = vld [vmem:[#allocation5 + $0xb48] sm:$0xff]  ;;  %v390_v27 = vld [vmem:[#allocation5 + $0x680] sm:$0xff]  ;;  %v445_v30 = vld [vmem:[#allocation5 + $0x838] sm:$0xff] }
  0x4d   : > { %648 = vmatpush.msra.mxu1 %v335_v53  ;;  %669 = vmatpush.msra.mxu2 %v470_v55  ;;  %v247_v25 = vld [vmem:[#allocation5 + $0x208] sm:$0xff]  ;;  %v534_v28 = vld [vmem:[#allocation5 + $0xb00] sm:$0xff]  ;;  %v381_v31 = vld [vmem:[#allocation5 + $0x638] sm:$0xff] }
  0x4e   : > { %629 = vmatpush.msra.mxu0 %v182_v56  ;;  %686 = vmatpush.msra.mxu3 %v210_v6  ;;  %v238_v29 = vld [vmem:[#allocation5 + $0x1c0] sm:$0xff]  ;;  %v525_v32 = vld [vmem:[#allocation5 + $0xab8] sm:$0xff]  ;;  %v436_v34 = vld [vmem:[#allocation5 + $0x7f0] sm:$0xff] }
  0x4f   : > { %734 = vmatpush.msrb.mxu2 %v319_v57  ;;  %649 = vmatpush.msra.mxu1 %v326_v58  ;;  %v229_v33 = vld [vmem:[#allocation5 + $0x178] sm:$0xff]  ;;  %v372_v35 = vld [vmem:[#allocation5 + $0x5f0] sm:$0xff]  ;;  %v427_v38 = vld [vmem:[#allocation5 + $0x7a8] sm:$0xff] }
  0x50   : > { %694 = vmatpush.msrb.mxu0 %v462_v59  ;;  %687 = vmatpush.msra.mxu3 %v201_v10  ;;  %v516_v36 = vld [vmem:[#allocation5 + $0xa70] sm:$0xff]  ;;  %v363_v39 = vld [vmem:[#allocation5 + $0x5a8] sm:$0xff]  ;;  %v418_v42 = vld [vmem:[#allocation5 + $0x760] sm:$0xff] }
  0x51   : > { %714 = vmatpush.msrb.mxu1 %v606_v60  ;;  %735 = vmatpush.msrb.mxu2 %v310_v61  ;;  %v220_v37 = vld [vmem:[#allocation5 + $0x130] sm:$0xff]  ;;  %v507_v40 = vld [vmem:[#allocation5 + $0xa28] sm:$0xff]  ;;  %v354_v43 = vld [vmem:[#allocation5 + $0x560] sm:$0xff] }
  0x52   : > { %695 = vmatpush.msrb.mxu0 %v453_v63  ;;  %688 = vmatpush.msra.mxu3 %v192_v14  ;;  %v211_v41 = vld [vmem:[#allocation5 + $0xe8] sm:$0xff]  ;;  %v498_v44 = vld [vmem:[#allocation5 + $0x9e0] sm:$0xff]  ;;  %v345_v47 = vld [vmem:[#allocation5 + $0x518] sm:$0xff] }
  0x53   : > { %715 = vmatpush.msrb.mxu1 %v597_v0  ;;  %736 = vmatpush.msrb.mxu2 %v301_v1  ;;  %v202_v45 = vld [vmem:[#allocation5 + $0xa0] sm:$0xff]  ;;  %v1593_v46 = vld [vmem:[%s1582_s7] sm:$0xff]  ;;  %v489_v48 = vld [vmem:[#allocation5 + $0x998] sm:$0xff] }
  0x54   : > { %696 = vmatpush.msrb.mxu0 %v444_v3  ;;  %689 = vmatpush.msra.mxu3 %v183_v18  ;;  %v193_v49 = vld [vmem:[#allocation5 + $0x58] sm:$0xff]  ;;  %v336_v52 = vld [vmem:[#allocation5 + $0x4d0] sm:$0xff]  ;;  %v327_v56 = vld [vmem:[#allocation5 + $0x488] sm:$0xff] }
  0x55   : > { %716 = vmatpush.msrb.mxu1 %v588_v4  ;;  %737 = vmatpush.msrb.mxu2 %v292_v5  ;;  %v1596_v50 = vld [vmem:[%s1582_s7 + $0x8] sm:$0xff]  ;;  %v1599_v51 = vld [vmem:[%s1582_s7 + $0x10] sm:$0xff]  ;;  %v471_v57 = vld [vmem:[#allocation5 + $0x908] sm:$0xff] }
  0x56   : > { %697 = vmatpush.msrb.mxu0 %v435_v7  ;;  %754 = vmatpush.msrb.mxu3 %v463_v22  ;;  %v184_v53 = vld [vmem:[#allocation5 + $0x10] sm:$0xff]  ;;  %v409_v58 = vld [vmem:[#allocation5 + $0x718] sm:$0xff]  ;;  %v455_v59 = vld [vmem:[#allocation5 + $0x888] sm:$0xff] }
  0x57   : > { %717 = vmatpush.msrb.mxu1 %v579_v8  ;;  %738 = vmatpush.msrb.mxu2 %v283_v9  ;;  %v480_v54 = vld [vmem:[#allocation5 + $0x950] sm:$0xff]  ;;  %v607_v60 = vld [vmem:[#allocation5 + $0xd48] sm:$0xff]  ;;  %v446_v63 = vld [vmem:[#allocation5 + $0x840] sm:$0xff] }
  0x58   : > { %698 = vmatpush.msrb.mxu0 %v426_v11  ;;  %755 = vmatpush.msrb.mxu3 %v454_v26  ;;  %v464_v55 = vld [vmem:[#allocation5 + $0x8d0] sm:$0xff]  ;;  %v598_v0 = vld [vmem:[#allocation5 + $0xd00] sm:$0xff]  ;;  %v311_v1 = vld [vmem:[#allocation5 + $0x408] sm:$0xff] }
  0x59   : > { %718 = vmatpush.msrb.mxu1 %v570_v12  ;;  %739 = vmatpush.msrb.mxu2 %v274_v13  ;;  %v320_v61 = vld [vmem:[#allocation5 + $0x450] sm:$0xff]  ;;  %v391_v2 = vld [vmem:[#allocation5 + $0x688] sm:$0xff]  ;;  %v437_v3 = vld [vmem:[#allocation5 + $0x7f8] sm:$0xff] }
  0x5a   : > { %699 = vmatpush.msrb.mxu0 %v417_v15  ;;  %756 = vmatpush.msrb.mxu3 %v445_v30  ;;  %v400_v62 = vld [vmem:[#allocation5 + $0x6d0] sm:$0xff]  ;;  %v589_v4 = vld [vmem:[#allocation5 + $0xcb8] sm:$0xff]  ;;  %v302_v5 = vld [vmem:[#allocation5 + $0x3c0] sm:$0xff] }
  0x5b   : > { %719 = vmatpush.msrb.mxu1 %v561_v16  ;;  %740 = vmatpush.msrb.mxu2 %v265_v17  ;;  %v382_v6 = vld [vmem:[#allocation5 + $0x640] sm:$0xff]  ;;  %v428_v7 = vld [vmem:[#allocation5 + $0x7b0] sm:$0xff]  ;;  %v293_v9 = vld [vmem:[#allocation5 + $0x378] sm:$0xff] }
  0x5c   : > { %700 = vmatpush.msrb.mxu0 %v408_v19  ;;  %757 = vmatpush.msrb.mxu3 %v436_v34  ;;  %v580_v8 = vld [vmem:[#allocation5 + $0xc70] sm:$0xff]  ;;  %v373_v10 = vld [vmem:[#allocation5 + $0x5f8] sm:$0xff]  ;;  %v419_v11 = vld [vmem:[#allocation5 + $0x768] sm:$0xff] }
  0x5d   : > { %720 = vmatpush.msrb.mxu1 %v552_v20  ;;  %741 = vmatpush.msrb.mxu2 %v256_v21  ;;  %v571_v12 = vld [vmem:[#allocation5 + $0xc28] sm:$0xff]  ;;  %v284_v13 = vld [vmem:[#allocation5 + $0x330] sm:$0xff]  ;;  %v410_v15 = vld [vmem:[#allocation5 + $0x720] sm:$0xff] }
  0x5e   : > { %701 = vmatpush.msrb.mxu0 %v399_v23  ;;  %758 = vmatpush.msrb.mxu3 %v427_v38  ;;  %v364_v14 = vld [vmem:[#allocation5 + $0x5b0] sm:$0xff]  ;;  %v562_v16 = vld [vmem:[#allocation5 + $0xbe0] sm:$0xff]  ;;  %v275_v17 = vld [vmem:[#allocation5 + $0x2e8] sm:$0xff] }
  0x5f   : > { %721 = vmatpush.msrb.mxu1 %v543_v24  ;;  %742 = vmatpush.msrb.mxu2 %v247_v25  ;;  %v355_v18 = vld [vmem:[#allocation5 + $0x568] sm:$0xff]  ;;  %v401_v19 = vld [vmem:[#allocation5 + $0x6d8] sm:$0xff]  ;;  %v266_v21 = vld [vmem:[#allocation5 + $0x2a0] sm:$0xff] }
  0x60   : > { %702 = vmatpush.msrb.mxu0 %v390_v27  ;;  %759 = vmatpush.msrb.mxu3 %v418_v42  ;;  %v553_v20 = vld [vmem:[#allocation5 + $0xb98] sm:$0xff]  ;;  %v346_v22 = vld [vmem:[#allocation5 + $0x520] sm:$0xff]  ;;  %v392_v23 = vld [vmem:[#allocation5 + $0x690] sm:$0xff] }
  0x61   : > { %722 = vmatpush.msrb.mxu1 %v534_v28  ;;  %743 = vmatpush.msrb.mxu2 %v238_v29  ;;  %v544_v24 = vld [vmem:[#allocation5 + $0xb50] sm:$0xff]  ;;  %v257_v25 = vld [vmem:[#allocation5 + $0x258] sm:$0xff]  ;;  %v383_v27 = vld [vmem:[#allocation5 + $0x648] sm:$0xff] }
  0x62   : > { %703 = vmatpush.msrb.mxu0 %v381_v31  ;;  %650 = vmatmul.f32.vlgmr.msra.gmra.mxu1 %v1596_v50  ;;  %v337_v26 = vld [vmem:[#allocation5 + $0x4d8] sm:$0xff]  ;;  %v535_v28 = vld [vmem:[#allocation5 + $0xb08] sm:$0xff]  ;;  %v248_v29 = vld [vmem:[#allocation5 + $0x210] sm:$0xff] }
  0x63   : > { %723 = vmatpush.msrb.mxu1 %v525_v32  ;;  %744 = vmatpush.msrb.mxu2 %v229_v33  ;;  %v328_v30 = vld [vmem:[#allocation5 + $0x490] sm:$0xff]  ;;  %v374_v31 = vld [vmem:[#allocation5 + $0x600] sm:$0xff]  ;;  %v239_v33 = vld [vmem:[#allocation5 + $0x1c8] sm:$0xff] }
  0x64   : > { %704 = vmatpush.msrb.mxu0 %v372_v35  ;;  %670 = vmatmul.f32.vlgmr.msra.gmra.mxu2 %v1599_v51  ;;  %v526_v32 = vld [vmem:[#allocation5 + $0xac0] sm:$0xff]  ;;  %v365_v34 = vld [vmem:[#allocation5 + $0x5b8] sm:$0xff]  ;;  %v608_v35 = vld [vmem:[#allocation5 + $0xd50] sm:$0xff] }
  0x65   : > { %724 = vmatpush.msrb.mxu1 %v516_v36  ;;  %745 = vmatpush.msrb.mxu2 %v220_v37  ;;  %v517_v36 = vld [vmem:[#allocation5 + $0xa78] sm:$0xff]  ;;  %v230_v37 = vld [vmem:[#allocation5 + $0x180] sm:$0xff]  ;;  %v356_v38 = vld [vmem:[#allocation5 + $0x570] sm:$0xff] }
  0x66   : > { %705 = vmatpush.msrb.mxu0 %v363_v39  ;;  %760 = vmatpush.msrb.mxu3 %v409_v58  ;;  %v599_v39 = vld [vmem:[#allocation5 + $0xd08] sm:$0xff] }
  0x67   : > { %725 = vmatpush.msrb.mxu1 %v507_v40  ;;  %746 = vmatpush.msrb.mxu2 %v211_v41  ;;  %v508_v40 = vld [vmem:[#allocation5 + $0xa30] sm:$0xff]  ;;  %v221_v41 = vld [vmem:[#allocation5 + $0x138] sm:$0xff]  ;;  %v347_v42 = vld [vmem:[#allocation5 + $0x528] sm:$0xff] }
  0x68   : > { %706 = vmatpush.msrb.mxu0 %v354_v43  ;;  %761 = vmatpush.msrb.mxu3 %v400_v62  ;;  %v590_v43 = vld [vmem:[#allocation5 + $0xcc0] sm:$0xff]  ;;  %v563_v58 = vld [vmem:[#allocation5 + $0xbe8] sm:$0xff] }
  0x69   : > { %726 = vmatpush.msrb.mxu1 %v498_v44  ;;  %747 = vmatpush.msrb.mxu2 %v202_v45  ;;  %v499_v44 = vld [vmem:[#allocation5 + $0x9e8] sm:$0xff]  ;;  %v212_v45 = vld [vmem:[#allocation5 + $0xf0] sm:$0xff]  ;;  %v554_v62 = vld [vmem:[#allocation5 + $0xba0] sm:$0xff] }
  0x6a   : > { %630 = vmatmul.f32.vlgmr.msra.gmra.mxu0 %v1593_v46  ;;  %762 = vmatpush.msrb.mxu3 %v391_v2  ;;  %v545_v2 = vld [vmem:[#allocation5 + $0xb58] sm:$0xff] }
  0x6b   : > { %707 = vmatpush.msrb.mxu0 %v345_v47  ;;  %727 = vmatpush.msrb.mxu1 %v489_v48  ;;  %v338_v47 = vld [vmem:[#allocation5 + $0x4e0] sm:$0xff]  ;;  %v581_v48 = vld [vmem:[#allocation5 + $0xc78] sm:$0xff] }
  0x6c   : > { %748 = vmatpush.msrb.mxu2 %v193_v49  ;;  %763 = vmatpush.msrb.mxu3 %v382_v6  ;;  %v490_v49 = vld [vmem:[#allocation5 + $0x9a0] sm:$0xff]  ;;  %v536_v6 = vld [vmem:[#allocation5 + $0xb10] sm:$0xff] }
  0x6d   : > { %708 = vmatpush.msrb.mxu0 %v336_v52  ;;  %728 = vmatpush.msrb.mxu1 %v480_v54  ;;  %v203_v52 = vld [vmem:[#allocation5 + $0xa8] sm:$0xff]  ;;  %v572_v54 = vld [vmem:[#allocation5 + $0xc30] sm:$0xff] }
  0x6e   : > { %749 = vmatpush.msrb.mxu2 %v184_v53  ;;  %764 = vmatpush.msrb.mxu3 %v373_v10  ;;  %v329_v53 = vld [vmem:[#allocation5 + $0x498] sm:$0xff]  ;;  %v527_v10 = vld [vmem:[#allocation5 + $0xac8] sm:$0xff] }
  0x6f   : > { %709 = vmatpush.msrb.mxu0 %v327_v56  ;;  %729 = vmatpush.msrb.mxu1 %v471_v57  ;;  %v481_v56 = vld [vmem:[#allocation5 + $0x958] sm:$0xff]  ;;  %v194_v57 = vld [vmem:[#allocation5 + $0x60] sm:$0xff] }
  0x70   : > { %814 = vmatpush.msra.mxu2 %v464_v55  ;;  %765 = vmatpush.msrb.mxu3 %v364_v14  ;;  %v609_v55 = vld [vmem:[#allocation5 + $0xd58] sm:$0xff]  ;;  %v518_v14 = vld [vmem:[#allocation5 + $0xa80] sm:$0xff] }
  0x71   : > { %774 = vmatpush.msra.mxu0 %v607_v60  ;;  %794 = vmatpush.msra.mxu1 %v320_v61  ;;  %v472_v60 = vld [vmem:[#allocation5 + $0x910] sm:$0xff]  ;;  %v185_v61 = vld [vmem:[#allocation5 + $0x18] sm:$0xff] }
  0x72   : > { %815 = vmatpush.msra.mxu2 %v455_v59  ;;  %766 = vmatpush.msrb.mxu3 %v355_v18  ;;  %v600_v59 = vld [vmem:[#allocation5 + $0xd10] sm:$0xff]  ;;  %v509_v18 = vld [vmem:[#allocation5 + $0xa38] sm:$0xff] }
  0x73   : > { %775 = vmatpush.msra.mxu0 %v598_v0  ;;  %795 = vmatpush.msra.mxu1 %v311_v1  ;;  %v465_v0 = vld [vmem:[#allocation5 + $0x8d8] sm:$0xff]  ;;  %v591_v1 = vld [vmem:[#allocation5 + $0xcc8] sm:$0xff] }
  0x74   : > { %816 = vmatpush.msra.mxu2 %v446_v63  ;;  %767 = vmatpush.msrb.mxu3 %v346_v22  ;;  %v321_v63 = vld [vmem:[#allocation5 + $0x458] sm:$0xff]  ;;  %v500_v22 = vld [vmem:[#allocation5 + $0x9f0] sm:$0xff] }
  0x75   : > { %776 = vmatpush.msra.mxu0 %v589_v4  ;;  %796 = vmatpush.msra.mxu1 %v302_v5  ;;  %v456_v4 = vld [vmem:[#allocation5 + $0x890] sm:$0xff]  ;;  %v582_v5 = vld [vmem:[#allocation5 + $0xc80] sm:$0xff] }
  0x76   : > { %817 = vmatpush.msra.mxu2 %v437_v3  ;;  %768 = vmatpush.msrb.mxu3 %v337_v26  ;;  %v312_v3 = vld [vmem:[#allocation5 + $0x410] sm:$0xff]  ;;  %v491_v26 = vld [vmem:[#allocation5 + $0x9a8] sm:$0xff] }
  0x77   : > { %777 = vmatpush.msra.mxu0 %v580_v8  ;;  %797 = vmatpush.msra.mxu1 %v293_v9  ;;  %v447_v8 = vld [vmem:[#allocation5 + $0x848] sm:$0xff]  ;;  %v573_v9 = vld [vmem:[#allocation5 + $0xc38] sm:$0xff] }
  0x78   : > { %818 = vmatpush.msra.mxu2 %v428_v7  ;;  %769 = vmatpush.msrb.mxu3 %v328_v30  ;;  %v303_v7 = vld [vmem:[#allocation5 + $0x3c8] sm:$0xff]  ;;  %v482_v30 = vld [vmem:[#allocation5 + $0x960] sm:$0xff] }
  0x79   : > { %778 = vmatpush.msra.mxu0 %v571_v12  ;;  %798 = vmatpush.msra.mxu1 %v284_v13  ;;  %v438_v12 = vld [vmem:[#allocation5 + $0x800] sm:$0xff]  ;;  %v564_v13 = vld [vmem:[#allocation5 + $0xbf0] sm:$0xff] }
  0x7a   : > { %819 = vmatpush.msra.mxu2 %v419_v11  ;;  %690 = vmatmul.f32.vlgmr.msra.gmra.mxu3 %v1593_v46  ;;  %v294_v11 = vld [vmem:[#allocation5 + $0x380] sm:$0xff] }
  0x7b   : > { %779 = vmatpush.msra.mxu0 %v562_v16  ;;  %799 = vmatpush.msra.mxu1 %v275_v17  ;;  %v429_v16 = vld [vmem:[#allocation5 + $0x7b8] sm:$0xff]  ;;  %v555_v17 = vld [vmem:[#allocation5 + $0xba8] sm:$0xff] }
  0x7c   : > { %820 = vmatpush.msra.mxu2 %v410_v15  ;;  %834 = vmatpush.msra.mxu3 %v608_v35  ;;  %v285_v15 = vld [vmem:[#allocation5 + $0x338] sm:$0xff]  ;;  %v240_v35 = vld [vmem:[#allocation5 + $0x1d0] sm:$0xff] }
  0x7d   : > { %780 = vmatpush.msra.mxu0 %v553_v20  ;;  %800 = vmatpush.msra.mxu1 %v266_v21  ;;  %v420_v20 = vld [vmem:[#allocation5 + $0x770] sm:$0xff]  ;;  %v546_v21 = vld [vmem:[#allocation5 + $0xb60] sm:$0xff] }
  0x7e   : > { %821 = vmatpush.msra.mxu2 %v401_v19  ;;  %835 = vmatpush.msra.mxu3 %v599_v39  ;;  %v276_v19 = vld [vmem:[#allocation5 + $0x2f0] sm:$0xff]  ;;  %v231_v39 = vld [vmem:[#allocation5 + $0x188] sm:$0xff] }
  0x7f   : > { %781 = vmatpush.msra.mxu0 %v544_v24  ;;  %801 = vmatpush.msra.mxu1 %v257_v25  ;;  %v411_v24 = vld [vmem:[#allocation5 + $0x728] sm:$0xff]  ;;  %v537_v25 = vld [vmem:[#allocation5 + $0xb18] sm:$0xff] }
  0x80   : > { %822 = vmatpush.msra.mxu2 %v392_v23  ;;  %836 = vmatpush.msra.mxu3 %v590_v43  ;;  %v267_v23 = vld [vmem:[#allocation5 + $0x2a8] sm:$0xff]  ;;  %v222_v43 = vld [vmem:[#allocation5 + $0x140] sm:$0xff] }
  0x81   : > { %782 = vmatpush.msra.mxu0 %v535_v28  ;;  %802 = vmatpush.msra.mxu1 %v248_v29  ;;  %v402_v28 = vld [vmem:[#allocation5 + $0x6e0] sm:$0xff]  ;;  %v528_v29 = vld [vmem:[#allocation5 + $0xad0] sm:$0xff] }
  0x82   : > { %823 = vmatpush.msra.mxu2 %v383_v27  ;;  %837 = vmatpush.msra.mxu3 %v581_v48  ;;  %v258_v27 = vld [vmem:[#allocation5 + $0x260] sm:$0xff]  ;;  %v213_v48 = vld [vmem:[#allocation5 + $0xf8] sm:$0xff] }
  0x83   : > { %783 = vmatpush.msra.mxu0 %v526_v32  ;;  %803 = vmatpush.msra.mxu1 %v239_v33  ;;  %v393_v32 = vld [vmem:[#allocation5 + $0x698] sm:$0xff]  ;;  %v519_v33 = vld [vmem:[#allocation5 + $0xa88] sm:$0xff] }
  0x84   : > { %824 = vmatpush.msra.mxu2 %v374_v31  ;;  %710 = vmatmul.f32.vlgmr.msrb.gmra.mxu0 %v1596_v50  ;;  %v249_v31 = vld [vmem:[#allocation5 + $0x218] sm:$0xff] }
  0x85   : > { %784 = vmatpush.msra.mxu0 %v517_v36  ;;  %804 = vmatpush.msra.mxu1 %v230_v37  ;;  %v384_v36 = vld [vmem:[#allocation5 + $0x650] sm:$0xff]  ;;  %v510_v37 = vld [vmem:[#allocation5 + $0xa40] sm:$0xff] }
  0x86   : > { %825 = vmatpush.msra.mxu2 %v365_v34  ;;  %770 = vmatmul.f32.vlgmr.msrb.gmra.mxu3 %v1596_v50  ;;  %v473_v34 = vld [vmem:[#allocation5 + $0x918] sm:$0xff] }
  0x87   : > { %785 = vmatpush.msra.mxu0 %v508_v40  ;;  %805 = vmatpush.msra.mxu1 %v221_v41  ;;  %v375_v40 = vld [vmem:[#allocation5 + $0x608] sm:$0xff]  ;;  %v501_v41 = vld [vmem:[#allocation5 + $0x9f8] sm:$0xff] }
  0x88   : > { %826 = vmatpush.msra.mxu2 %v356_v38  ;;  %838 = vmatpush.msra.mxu3 %v572_v54  ;;  %v322_v38 = vld [vmem:[#allocation5 + $0x460] sm:$0xff]  ;;  %v204_v54 = vld [vmem:[#allocation5 + $0xb0] sm:$0xff] }
  0x89   : > { %786 = vmatpush.msra.mxu0 %v499_v44  ;;  %806 = vmatpush.msra.mxu1 %v212_v45  ;;  %v366_v44 = vld [vmem:[#allocation5 + $0x5c0] sm:$0xff]  ;;  %v492_v45 = vld [vmem:[#allocation5 + $0x9b0] sm:$0xff] }
  0x8a   : > { %827 = vmatpush.msra.mxu2 %v347_v42  ;;  %839 = vmatpush.msra.mxu3 %v563_v58  ;;  %v313_v42 = vld [vmem:[#allocation5 + $0x418] sm:$0xff]  ;;  %v323_v58 = vld [vmem:[#allocation5 + $0x468] sm:$0xff] }
  0x8b   : > { %787 = vmatpush.msra.mxu0 %v490_v49  ;;  %807 = vmatpush.msra.mxu1 %v203_v52  ;;  %v357_v49 = vld [vmem:[#allocation5 + $0x578] sm:$0xff]  ;;  %v483_v52 = vld [vmem:[#allocation5 + $0x968] sm:$0xff] }
  0x8c   : > { %828 = vmatpush.msra.mxu2 %v338_v47  ;;  %730 = vmatmul.f32.vlgmr.msrb.gmra.mxu1 %v1599_v51  ;;  %v304_v47 = vld [vmem:[#allocation5 + $0x3d0] sm:$0xff] }
  0x8d   : > { %750 = vmatmul.f32.vlgmr.msrb.gmra.mxu2 %v1593_v46  ;;  %788 = vmatpush.msra.mxu0 %v481_v56  ;;  %v474_v56 = vld [vmem:[#allocation5 + $0x920] sm:$0xff] }
  0x8e   : > { %829 = vmatpush.msra.mxu2 %v329_v53  ;;  %808 = vmatpush.msra.mxu1 %v194_v57  ;;  %v295_v53 = vld [vmem:[#allocation5 + $0x388] sm:$0xff]  ;;  %v286_v57 = vld [vmem:[#allocation5 + $0x340] sm:$0xff] }
  0x8f   : > { %789 = vmatpush.msra.mxu0 %v472_v60  ;;  %840 = vmatpush.msra.mxu3 %v554_v62  ;;  %v339_v60 = vld [vmem:[#allocation5 + $0x4e8] sm:$0xff]  ;;  %v314_v62 = vld [vmem:[#allocation5 + $0x420] sm:$0xff] }
  0x90   : > { %894 = vmatpush.msrb.mxu2 %v609_v55  ;;  %809 = vmatpush.msra.mxu1 %v185_v61  ;;  %v348_v55 = vld [vmem:[#allocation5 + $0x530] sm:$0xff]  ;;  %v277_v61 = vld [vmem:[#allocation5 + $0x2f8] sm:$0xff] }
  0x91   : > { %854 = vmatpush.msrb.mxu0 %v321_v63  ;;  %841 = vmatpush.msra.mxu3 %v545_v2  ;;  %v186_v63 = vld [vmem:[#allocation5 + $0x20] sm:$0xff] }
  0x92   : > { %895 = vmatpush.msrb.mxu2 %v600_v59  ;;  %874 = vmatpush.msrb.mxu1 %v465_v0  ;;  %v195_v59 = vld [vmem:[#allocation5 + $0x68] sm:$0xff]  ;;  %v330_v0 = vld [vmem:[#allocation5 + $0x4a0] sm:$0xff] }
  0x93   : > { %855 = vmatpush.msrb.mxu0 %v312_v3  ;;  %842 = vmatpush.msra.mxu3 %v536_v6  ;;  %v466_v2 = vld [vmem:[#allocation5 + $0x8e0] sm:$0xff]  ;;  %v457_v6 = vld [vmem:[#allocation5 + $0x898] sm:$0xff] }
  0x94   : > { %896 = vmatpush.msrb.mxu2 %v591_v1  ;;  %875 = vmatpush.msrb.mxu1 %v456_v4  ;;  %v268_v1 = vld [vmem:[#allocation5 + $0x2b0] sm:$0xff]  ;;  %v610_v3 = vld [vmem:[#allocation5 + $0xd60] sm:$0xff]  ;;  %v305_v4 = vld [vmem:[#allocation5 + $0x3d8] sm:$0xff] }
  0x95   : > { %790 = vmatmul.f32.vlgmr.msra.gmra.mxu0 %v1599_v51  ;;  %843 = vmatpush.msra.mxu3 %v527_v10  ;;  %v448_v10 = vld [vmem:[#allocation5 + $0x850] sm:$0xff] }
  0x96   : > { %897 = vmatpush.msrb.mxu2 %v582_v5  ;;  %856 = vmatpush.msrb.mxu0 %v303_v7  ;;  %v259_v5 = vld [vmem:[#allocation5 + $0x268] sm:$0xff]  ;;  %v601_v7 = vld [vmem:[#allocation5 + $0xd18] sm:$0xff] }
  0x97   : > { %876 = vmatpush.msrb.mxu1 %v447_v8  ;;  %844 = vmatpush.msra.mxu3 %v518_v14  ;;  %v296_v8 = vld [vmem:[#allocation5 + $0x390] sm:$0xff]  ;;  %v439_v14 = vld [vmem:[#allocation5 + $0x808] sm:$0xff] }
  0x98   : > { %898 = vmatpush.msrb.mxu2 %v573_v9  ;;  %857 = vmatpush.msrb.mxu0 %v294_v11  ;;  %v250_v9 = vld [vmem:[#allocation5 + $0x220] sm:$0xff]  ;;  %v592_v11 = vld [vmem:[#allocation5 + $0xcd0] sm:$0xff] }
  0x99   : > { %877 = vmatpush.msrb.mxu1 %v438_v12  ;;  %845 = vmatpush.msra.mxu3 %v509_v18  ;;  %v287_v12 = vld [vmem:[#allocation5 + $0x348] sm:$0xff]  ;;  %v430_v18 = vld [vmem:[#allocation5 + $0x7c0] sm:$0xff] }
  0x9a   : > { %899 = vmatpush.msrb.mxu2 %v564_v13  ;;  %858 = vmatpush.msrb.mxu0 %v285_v15  ;;  %v241_v13 = vld [vmem:[#allocation5 + $0x1d8] sm:$0xff]  ;;  %v583_v15 = vld [vmem:[#allocation5 + $0xc88] sm:$0xff] }
  0x9b   : > { %878 = vmatpush.msrb.mxu1 %v429_v16  ;;  %846 = vmatpush.msra.mxu3 %v500_v22  ;;  %v278_v16 = vld [vmem:[#allocation5 + $0x300] sm:$0xff]  ;;  %v421_v22 = vld [vmem:[#allocation5 + $0x778] sm:$0xff] }
  0x9c   : > { %900 = vmatpush.msrb.mxu2 %v555_v17  ;;  %859 = vmatpush.msrb.mxu0 %v276_v19  ;;  %v232_v17 = vld [vmem:[#allocation5 + $0x190] sm:$0xff]  ;;  %v574_v19 = vld [vmem:[#allocation5 + $0xc40] sm:$0xff] }
  0x9d   : > { %879 = vmatpush.msrb.mxu1 %v420_v20  ;;  %847 = vmatpush.msra.mxu3 %v491_v26  ;;  %v269_v20 = vld [vmem:[#allocation5 + $0x2b8] sm:$0xff]  ;;  %v412_v26 = vld [vmem:[#allocation5 + $0x730] sm:$0xff] }
  0x9e   : > { %901 = vmatpush.msrb.mxu2 %v546_v21  ;;  %860 = vmatpush.msrb.mxu0 %v267_v23  ;;  %v223_v21 = vld [vmem:[#allocation5 + $0x148] sm:$0xff]  ;;  %v565_v23 = vld [vmem:[#allocation5 + $0xbf8] sm:$0xff] }
  0x9f   : > { %880 = vmatpush.msrb.mxu1 %v411_v24  ;;  %848 = vmatpush.msra.mxu3 %v482_v30  ;;  %v260_v24 = vld [vmem:[#allocation5 + $0x270] sm:$0xff]  ;;  %v403_v30 = vld [vmem:[#allocation5 + $0x6e8] sm:$0xff] }
  0xa0   : > { %902 = vmatpush.msrb.mxu2 %v537_v25  ;;  %861 = vmatpush.msrb.mxu0 %v258_v27  ;;  %v214_v25 = vld [vmem:[#allocation5 + $0x100] sm:$0xff]  ;;  %v556_v27 = vld [vmem:[#allocation5 + $0xbb0] sm:$0xff] }
  0xa1   : > { %881 = vmatpush.msrb.mxu1 %v402_v28  ;;  %849 = vmatpush.msra.mxu3 %v473_v34  ;;  %v251_v28 = vld [vmem:[#allocation5 + $0x228] sm:$0xff]  ;;  %v394_v34 = vld [vmem:[#allocation5 + $0x6a0] sm:$0xff] }
  0xa2   : > { %903 = vmatpush.msrb.mxu2 %v528_v29  ;;  %862 = vmatpush.msrb.mxu0 %v249_v31  ;;  %v205_v29 = vld [vmem:[#allocation5 + $0xb8] sm:$0xff]  ;;  %v547_v31 = vld [vmem:[#allocation5 + $0xb68] sm:$0xff] }
  0xa3   : > { %882 = vmatpush.msrb.mxu1 %v393_v32  ;;  %914 = vmatpush.msrb.mxu3 %v322_v38  ;;  %v242_v32 = vld [vmem:[#allocation5 + $0x1e0] sm:$0xff]  ;;  %v385_v38 = vld [vmem:[#allocation5 + $0x658] sm:$0xff] }
  0xa4   : > { %904 = vmatpush.msrb.mxu2 %v519_v33  ;;  %863 = vmatpush.msrb.mxu0 %v240_v35  ;;  %v196_v33 = vld [vmem:[#allocation5 + $0x70] sm:$0xff]  ;;  %v538_v35 = vld [vmem:[#allocation5 + $0xb20] sm:$0xff] }
  0xa5   : > { %883 = vmatpush.msrb.mxu1 %v384_v36  ;;  %915 = vmatpush.msrb.mxu3 %v313_v42  ;;  %v233_v36 = vld [vmem:[#allocation5 + $0x198] sm:$0xff]  ;;  %v376_v42 = vld [vmem:[#allocation5 + $0x610] sm:$0xff] }
  0xa6   : > { %905 = vmatpush.msrb.mxu2 %v510_v37  ;;  %864 = vmatpush.msrb.mxu0 %v231_v39  ;;  %v187_v37 = vld [vmem:[#allocation5 + $0x28] sm:$0xff]  ;;  %v529_v39 = vld [vmem:[#allocation5 + $0xad8] sm:$0xff] }
  0xa7   : > { %884 = vmatpush.msrb.mxu1 %v375_v40  ;;  %916 = vmatpush.msrb.mxu3 %v304_v47  ;;  %v224_v40 = vld [vmem:[#allocation5 + $0x150] sm:$0xff]  ;;  %v367_v47 = vld [vmem:[#allocation5 + $0x5c8] sm:$0xff] }
  0xa8   : > { %906 = vmatpush.msrb.mxu2 %v501_v41  ;;  %865 = vmatpush.msrb.mxu0 %v222_v43  ;;  %v467_v41 = vld [vmem:[#allocation5 + $0x8e8] sm:$0xff]  ;;  %v520_v43 = vld [vmem:[#allocation5 + $0xa90] sm:$0xff] }
  0xa9   : > { %885 = vmatpush.msrb.mxu1 %v366_v44  ;;  %830 = vmatmul.f32.vlgmr.msra.gmra.mxu2 %v1596_v50  ;;  %v215_v44 = vld [vmem:[#allocation5 + $0x108] sm:$0xff] }
  0xaa   : > { %907 = vmatpush.msrb.mxu2 %v492_v45  ;;  %866 = vmatpush.msrb.mxu0 %v213_v48  ;;  %v458_v45 = vld [vmem:[#allocation5 + $0x8a0] sm:$0xff]  ;;  %v511_v48 = vld [vmem:[#allocation5 + $0xa48] sm:$0xff] }
  0xab   : > { %886 = vmatpush.msrb.mxu1 %v357_v49  ;;  %917 = vmatpush.msrb.mxu3 %v295_v53  ;;  %v206_v49 = vld [vmem:[#allocation5 + $0xc0] sm:$0xff] }
  0xac   : > { %908 = vmatpush.msrb.mxu2 %v483_v52  ;;  %867 = vmatpush.msrb.mxu0 %v204_v54  ;;  %v449_v52 = vld [vmem:[#allocation5 + $0x858] sm:$0xff]  ;;  %v358_v53 = vld [vmem:[#allocation5 + $0x580] sm:$0xff] }
  0xad   : > { %887 = vmatpush.msrb.mxu1 %v348_v55  ;;  %850 = vmatmul.f32.vlgmr.msra.gmra.mxu3 %v1599_v51  ;;  %v502_v54 = vld [vmem:[#allocation5 + $0xa00] sm:$0xff]  ;;  %v197_v55 = vld [vmem:[#allocation5 + $0x78] sm:$0xff] }
  0xae   : > { %909 = vmatpush.msrb.mxu2 %v474_v56  ;;  %918 = vmatpush.msrb.mxu3 %v286_v57  ;;  %v440_v56 = vld [vmem:[#allocation5 + $0x810] sm:$0xff]  ;;  %v349_v57 = vld [vmem:[#allocation5 + $0x538] sm:$0xff] }
  0xaf   : > { %868 = vmatpush.msrb.mxu0 %v195_v59  ;;  %888 = vmatpush.msrb.mxu1 %v339_v60  ;;  %v188_v59 = vld [vmem:[#allocation5 + $0x30] sm:$0xff]  ;;  %v431_v60 = vld [vmem:[#allocation5 + $0x7c8] sm:$0xff] }
  0xb0   : > { %974 = vmatpush.msra.mxu2 %v323_v58  ;;  %919 = vmatpush.msrb.mxu3 %v277_v61  ;;  %v493_v58 = vld [vmem:[#allocation5 + $0x9b8] sm:$0xff]  ;;  %v340_v61 = vld [vmem:[#allocation5 + $0x4f0] sm:$0xff] }
  0xb1   : > { %869 = vmatpush.msrb.mxu0 %v186_v63  ;;  %889 = vmatpush.msrb.mxu1 %v330_v0  ;;  %v484_v63 = vld [vmem:[#allocation5 + $0x970] sm:$0xff]  ;;  %v422_v0 = vld [vmem:[#allocation5 + $0x780] sm:$0xff] }
  0xb2   : > { %975 = vmatpush.msra.mxu2 %v314_v62  ;;  %810 = vmatmul.f32.vlgmr.msra.gmra.mxu1 %v1593_v46  ;;  %v468_v62 = vld [vmem:[#allocation5 + $0x8f0] sm:$0xff] }
  0xb3   : > { %920 = vmatpush.msrb.mxu3 %v268_v1  ;;  %934 = vmatpush.msra.mxu0 %v466_v2  ;;  %v331_v1 = vld [vmem:[#allocation5 + $0x4a8] sm:$0xff] }
  0xb4   : > { %954 = vmatpush.msra.mxu1 %v610_v3  ;;  %976 = vmatpush.msra.mxu2 %v305_v4  ;;  %v459_v2 = vld [vmem:[#allocation5 + $0x8a8] sm:$0xff]  ;;  %v413_v4 = vld [vmem:[#allocation5 + $0x738] sm:$0xff] }
  0xb5   : > { %921 = vmatpush.msrb.mxu3 %v259_v5  ;;  %935 = vmatpush.msra.mxu0 %v457_v6  ;;  %v475_v3 = vld [vmem:[#allocation5 + $0x928] sm:$0xff]  ;;  %v324_v6 = vld [vmem:[#allocation5 + $0x470] sm:$0xff] }
  0xb6   : > { %955 = vmatpush.msra.mxu1 %v601_v7  ;;  %977 = vmatpush.msra.mxu2 %v296_v8  ;;  %v611_v5 = vld [vmem:[#allocation5 + $0xd68] sm:$0xff]  ;;  %v450_v7 = vld [vmem:[#allocation5 + $0x860] sm:$0xff]  ;;  %v404_v8 = vld [vmem:[#allocation5 + $0x6f0] sm:$0xff] }
  0xb7   : > { %922 = vmatpush.msrb.mxu3 %v250_v9  ;;  %936 = vmatpush.msra.mxu0 %v448_v10  ;;  %v602_v9 = vld [vmem:[#allocation5 + $0xd20] sm:$0xff]  ;;  %v441_v10 = vld [vmem:[#allocation5 + $0x818] sm:$0xff] }
  0xb8   : > { %956 = vmatpush.msra.mxu1 %v592_v11  ;;  %978 = vmatpush.msra.mxu2 %v287_v12  ;;  %v395_v11 = vld [vmem:[#allocation5 + $0x6a8] sm:$0xff]  ;;  %v593_v12 = vld [vmem:[#allocation5 + $0xcd8] sm:$0xff] }
  0xb9   : > { %923 = vmatpush.msrb.mxu3 %v241_v13  ;;  %937 = vmatpush.msra.mxu0 %v439_v14  ;;  %v306_v13 = vld [vmem:[#allocation5 + $0x3e0] sm:$0xff]  ;;  %v432_v14 = vld [vmem:[#allocation5 + $0x7d0] sm:$0xff] }
  0xba   : > { %957 = vmatpush.msra.mxu1 %v583_v15  ;;  %979 = vmatpush.msra.mxu2 %v278_v16  ;;  %v386_v15 = vld [vmem:[#allocation5 + $0x660] sm:$0xff]  ;;  %v423_v16 = vld [vmem:[#allocation5 + $0x788] sm:$0xff] }
  0xbb   : > { %924 = vmatpush.msrb.mxu3 %v232_v17  ;;  %938 = vmatpush.msra.mxu0 %v430_v18  ;;  %v377_v17 = vld [vmem:[#allocation5 + $0x618] sm:$0xff]  ;;  %v575_v18 = vld [vmem:[#allocation5 + $0xc48] sm:$0xff] }
  0xbc   : > { %958 = vmatpush.msra.mxu1 %v574_v19  ;;  %980 = vmatpush.msra.mxu2 %v269_v20  ;;  %v288_v19 = vld [vmem:[#allocation5 + $0x350] sm:$0xff]  ;;  %v414_v20 = vld [vmem:[#allocation5 + $0x740] sm:$0xff] }
  0xbd   : > { %925 = vmatpush.msrb.mxu3 %v223_v21  ;;  %939 = vmatpush.msra.mxu0 %v421_v22  ;;  %v368_v21 = vld [vmem:[#allocation5 + $0x5d0] sm:$0xff]  ;;  %v566_v22 = vld [vmem:[#allocation5 + $0xc00] sm:$0xff] }
  0xbe   : > { %959 = vmatpush.msra.mxu1 %v565_v23  ;;  %981 = vmatpush.msra.mxu2 %v260_v24  ;;  %v279_v23 = vld [vmem:[#allocation5 + $0x308] sm:$0xff]  ;;  %v405_v24 = vld [vmem:[#allocation5 + $0x6f8] sm:$0xff] }
  0xbf   : > { %926 = vmatpush.msrb.mxu3 %v214_v25  ;;  %940 = vmatpush.msra.mxu0 %v412_v26  ;;  %v359_v25 = vld [vmem:[#allocation5 + $0x588] sm:$0xff]  ;;  %v557_v26 = vld [vmem:[#allocation5 + $0xbb8] sm:$0xff] }
  0xc0   : > { %960 = vmatpush.msra.mxu1 %v556_v27  ;;  %982 = vmatpush.msra.mxu2 %v251_v28  ;;  %v270_v27 = vld [vmem:[#allocation5 + $0x2c0] sm:$0xff]  ;;  %v396_v28 = vld [vmem:[#allocation5 + $0x6b0] sm:$0xff] }
  0xc1   : > { %927 = vmatpush.msrb.mxu3 %v205_v29  ;;  %941 = vmatpush.msra.mxu0 %v403_v30  ;;  %v350_v29 = vld [vmem:[#allocation5 + $0x540] sm:$0xff]  ;;  %v548_v30 = vld [vmem:[#allocation5 + $0xb70] sm:$0xff] }
  0xc2   : > { %961 = vmatpush.msra.mxu1 %v547_v31  ;;  %983 = vmatpush.msra.mxu2 %v242_v32  ;;  %v261_v31 = vld [vmem:[#allocation5 + $0x278] sm:$0xff]  ;;  %v387_v32 = vld [vmem:[#allocation5 + $0x668] sm:$0xff] }
  0xc3   : > { %928 = vmatpush.msrb.mxu3 %v196_v33  ;;  %942 = vmatpush.msra.mxu0 %v394_v34  ;;  %v341_v33 = vld [vmem:[#allocation5 + $0x4f8] sm:$0xff]  ;;  %v539_v34 = vld [vmem:[#allocation5 + $0xb28] sm:$0xff] }
  0xc4   : > { %962 = vmatpush.msra.mxu1 %v538_v35  ;;  %984 = vmatpush.msra.mxu2 %v233_v36  ;;  %v252_v35 = vld [vmem:[#allocation5 + $0x230] sm:$0xff]  ;;  %v378_v36 = vld [vmem:[#allocation5 + $0x620] sm:$0xff] }
  0xc5   : > { %929 = vmatpush.msrb.mxu3 %v187_v37  ;;  %943 = vmatpush.msra.mxu0 %v385_v38  ;;  %v332_v37 = vld [vmem:[#allocation5 + $0x4b0] sm:$0xff]  ;;  %v530_v38 = vld [vmem:[#allocation5 + $0xae0] sm:$0xff] }
  0xc6   : > { %963 = vmatpush.msra.mxu1 %v529_v39  ;;  %985 = vmatpush.msra.mxu2 %v224_v40  ;;  %v243_v39 = vld [vmem:[#allocation5 + $0x1e8] sm:$0xff]  ;;  %v369_v40 = vld [vmem:[#allocation5 + $0x5d8] sm:$0xff] }
  0xc7   : > { %994 = vmatpush.msra.mxu3 %v467_v41  ;;  %944 = vmatpush.msra.mxu0 %v376_v42  ;;  %v521_v41 = vld [vmem:[#allocation5 + $0xa98] sm:$0xff]  ;;  %v612_v42 = vld [vmem:[#allocation5 + $0xd70] sm:$0xff] }
  0xc8   : > { %964 = vmatpush.msra.mxu1 %v520_v43  ;;  %986 = vmatpush.msra.mxu2 %v215_v44  ;;  %v234_v43 = vld [vmem:[#allocation5 + $0x1a0] sm:$0xff]  ;;  %v360_v44 = vld [vmem:[#allocation5 + $0x590] sm:$0xff] }
  0xc9   : > { %995 = vmatpush.msra.mxu3 %v458_v45  ;;  %945 = vmatpush.msra.mxu0 %v367_v47  ;;  %v512_v45 = vld [vmem:[#allocation5 + $0xa50] sm:$0xff] }
  0xca   : > { %965 = vmatpush.msra.mxu1 %v511_v48  ;;  %987 = vmatpush.msra.mxu2 %v206_v49  ;;  %v1617_v49 = vld [vmem:[%s1582_s7] sm:$0xff] }
  0xcb   : > { %996 = vmatpush.msra.mxu3 %v449_v52  ;;  %946 = vmatpush.msra.mxu0 %v358_v53  ;;  %v603_v52 = vld [vmem:[#allocation5 + $0xd28] sm:$0xff]  ;;  %v225_v53 = vld [vmem:[#allocation5 + $0x158] sm:$0xff] }
  0xcc   : > { %966 = vmatpush.msra.mxu1 %v502_v54  ;;  %988 = vmatpush.msra.mxu2 %v197_v55  ;;  %v351_v54 = vld [vmem:[#allocation5 + $0x548] sm:$0xff] }
  0xcd   : > { %997 = vmatpush.msra.mxu3 %v440_v56  ;;  %947 = vmatpush.msra.mxu0 %v349_v57  ;;  %v503_v55 = vld [vmem:[#allocation5 + $0xa08] sm:$0xff]  ;;  %v594_v56 = vld [vmem:[#allocation5 + $0xce0] sm:$0xff]  ;;  %v216_v57 = vld [vmem:[#allocation5 + $0x110] sm:$0xff] }
  0xce   : > { %967 = vmatpush.msra.mxu1 %v493_v58  ;;  %989 = vmatpush.msra.mxu2 %v188_v59  ;;  %v342_v59 = vld [vmem:[#allocation5 + $0x500] sm:$0xff] }
  0xcf   : > { %998 = vmatpush.msra.mxu3 %v431_v60  ;;  %910 = vmatmul.f32.vlgmr.msrb.gmra.mxu2 %v1599_v51  ;;  %v315_v51 = vld [vmem:[#allocation5 + $0x428] sm:$0xff]  ;;  %v494_v60 = vld [vmem:[#allocation5 + $0x9c0] sm:$0xff] }
  0xd0   : > { %948 = vmatpush.msra.mxu0 %v340_v61  ;;  %1054 = vmatpush.msrb.mxu2 %v468_v62  ;;  %v585_v61 = vld [vmem:[#allocation5 + $0xc98] sm:$0xff]  ;;  %v207_v62 = vld [vmem:[#allocation5 + $0xc8] sm:$0xff] }
  0xd1   : > { %968 = vmatpush.msra.mxu1 %v484_v63  ;;  %999 = vmatpush.msra.mxu3 %v422_v0  ;;  %v333_v63 = vld [vmem:[#allocation5 + $0x4b8] sm:$0xff] }
  0xd2   : > { %949 = vmatpush.msra.mxu0 %v331_v1  ;;  %1055 = vmatpush.msrb.mxu2 %v459_v2  ;;  %v576_v2 = vld [vmem:[#allocation5 + $0xc50] sm:$0xff] }
  0xd3   : > { %969 = vmatpush.msra.mxu1 %v475_v3  ;;  %870 = vmatmul.f32.vlgmr.msrb.gmra.mxu0 %v1593_v46  ;;  %v584_v46 = vld [vmem:[#allocation5 + $0xc90] sm:$0xff]  ;;  %v613_v3 = vld [vmem:[#allocation5 + $0xd78] sm:$0xff] }
  0xd4   : > { %890 = vmatmul.f32.vlgmr.msrb.gmra.mxu1 %v1596_v50  ;;  %1000 = vmatpush.msra.mxu3 %v413_v4  ;;  %v297_v50 = vld [vmem:[#allocation5 + $0x398] sm:$0xff] }
  0xd5   : > { %1014 = vmatpush.msrb.mxu0 %v611_v5  ;;  %1034 = vmatpush.msrb.mxu1 %v324_v6  ;;  %v1622_v4 = vld [vmem:[%s1582_s7 + $0x8] sm:$0xff]  ;;  %v198_v6 = vld [vmem:[#allocation5 + $0x80] sm:$0xff] }
  0xd6   : > { %1056 = vmatpush.msrb.mxu2 %v450_v7  ;;  %1001 = vmatpush.msra.mxu3 %v404_v8  ;;  %v485_v5 = vld [vmem:[#allocation5 + $0x978] sm:$0xff]  ;;  %v567_v7 = vld [vmem:[#allocation5 + $0xc08] sm:$0xff]  ;;  %v604_v8 = vld [vmem:[#allocation5 + $0xd30] sm:$0xff] }
  0xd7   : > { %1015 = vmatpush.msrb.mxu0 %v602_v9  ;;  %1035 = vmatpush.msrb.mxu1 %v315_v51  ;;  %v476_v9 = vld [vmem:[#allocation5 + $0x930] sm:$0xff]  ;;  %v189_v51 = vld [vmem:[#allocation5 + $0x38] sm:$0xff] }
  0xd8   : > { %1057 = vmatpush.msrb.mxu2 %v441_v10  ;;  %1002 = vmatpush.msra.mxu3 %v395_v11  ;;  %v558_v10 = vld [vmem:[#allocation5 + $0xbc0] sm:$0xff]  ;;  %v325_v11 = vld [vmem:[#allocation5 + $0x478] sm:$0xff] }
  0xd9   : > { %1016 = vmatpush.msrb.mxu0 %v593_v12  ;;  %1036 = vmatpush.msrb.mxu1 %v306_v13  ;;  %v469_v12 = vld [vmem:[#allocation5 + $0x8f8] sm:$0xff]  ;;  %v595_v13 = vld [vmem:[#allocation5 + $0xce8] sm:$0xff] }
  0xda   : > { %1058 = vmatpush.msrb.mxu2 %v432_v14  ;;  %1003 = vmatpush.msra.mxu3 %v386_v15  ;;  %v549_v14 = vld [vmem:[#allocation5 + $0xb78] sm:$0xff] }
  0xdb   : > { %1017 = vmatpush.msrb.mxu0 %v584_v46  ;;  %1037 = vmatpush.msrb.mxu1 %v297_v50  ;;  %v1631_v15 = vld [vmem:[%s1582_s7 + $0x10] sm:$0xff]  ;;  %v316_v46 = vld [vmem:[#allocation5 + $0x430] sm:$0xff] }
  0xdc   : > { %1059 = vmatpush.msrb.mxu2 %v423_v16  ;;  %1004 = vmatpush.msra.mxu3 %v377_v17  ;;  %v460_v50 = vld [vmem:[#allocation5 + $0x8b0] sm:$0xff]  ;;  %v586_v16 = vld [vmem:[#allocation5 + $0xca0] sm:$0xff] }
  0xdd   : > { %1018 = vmatpush.msrb.mxu0 %v575_v18  ;;  %1038 = vmatpush.msrb.mxu1 %v288_v19  ;;  %v540_v17 = vld [vmem:[#allocation5 + $0xb30] sm:$0xff]  ;;  %v307_v18 = vld [vmem:[#allocation5 + $0x3e8] sm:$0xff] }
  0xde   : > { %1060 = vmatpush.msrb.mxu2 %v414_v20  ;;  %1005 = vmatpush.msra.mxu3 %v368_v21  ;;  %v451_v19 = vld [vmem:[#allocation5 + $0x868] sm:$0xff]  ;;  %v577_v20 = vld [vmem:[#allocation5 + $0xc58] sm:$0xff] }
  0xdf   : > { %1019 = vmatpush.msrb.mxu0 %v566_v22  ;;  %1039 = vmatpush.msrb.mxu1 %v279_v23  ;;  %v651_v48 = vpop.f32.mrf.mxu1  ;;  %v531_v21 = vld [vmem:[#allocation5 + $0xae8] sm:$0xff]  ;;  %v298_v22 = vld [vmem:[#allocation5 + $0x3a0] sm:$0xff] }
  0xe0   : > { %1061 = vmatpush.msrb.mxu2 %v405_v24  ;;  %1006 = vmatpush.msra.mxu3 %v359_v25  ;;  %v442_v23 = vld [vmem:[#allocation5 + $0x820] sm:$0xff]  ;;  %v568_v24 = vld [vmem:[#allocation5 + $0xc10] sm:$0xff] }
  0xe1   : > { %1020 = vmatpush.msrb.mxu0 %v557_v26  ;;  %1040 = vmatpush.msrb.mxu1 %v270_v27  ;;  %v522_v25 = vld [vmem:[#allocation5 + $0xaa0] sm:$0xff]  ;;  %v289_v26 = vld [vmem:[#allocation5 + $0x358] sm:$0xff] }
  0xe2   : > { %1062 = vmatpush.msrb.mxu2 %v396_v28  ;;  %1007 = vmatpush.msra.mxu3 %v350_v29  ;;  %v433_v27 = vld [vmem:[#allocation5 + $0x7d8] sm:$0xff]  ;;  %v559_v28 = vld [vmem:[#allocation5 + $0xbc8] sm:$0xff] }
  0xe3   : > { %1021 = vmatpush.msrb.mxu0 %v548_v30  ;;  %1041 = vmatpush.msrb.mxu1 %v261_v31  ;;  %v513_v29 = vld [vmem:[#allocation5 + $0xa58] sm:$0xff]  ;;  %v280_v30 = vld [vmem:[#allocation5 + $0x310] sm:$0xff] }
  0xe4   : > { %1063 = vmatpush.msrb.mxu2 %v387_v32  ;;  %1008 = vmatpush.msra.mxu3 %v341_v33  ;;  %v424_v31 = vld [vmem:[#allocation5 + $0x790] sm:$0xff]  ;;  %v550_v32 = vld [vmem:[#allocation5 + $0xb80] sm:$0xff] }
  0xe5   : > { %1022 = vmatpush.msrb.mxu0 %v539_v34  ;;  %1042 = vmatpush.msrb.mxu1 %v252_v35  ;;  %v504_v33 = vld [vmem:[#allocation5 + $0xa10] sm:$0xff]  ;;  %v271_v34 = vld [vmem:[#allocation5 + $0x2c8] sm:$0xff] }
  0xe6   : > { %1064 = vmatpush.msrb.mxu2 %v378_v36  ;;  %1009 = vmatpush.msra.mxu3 %v332_v37  ;;  %v415_v35 = vld [vmem:[#allocation5 + $0x748] sm:$0xff]  ;;  %v541_v36 = vld [vmem:[#allocation5 + $0xb38] sm:$0xff] }
  0xe7   : > { %1023 = vmatpush.msrb.mxu0 %v530_v38  ;;  %1043 = vmatpush.msrb.mxu1 %v243_v39  ;;  %v631_v47 = vpop.f32.mrf.mxu0  ;;  %v671_v0 = vpop.f32.mrf.mxu2  ;;  %v495_v37 = vld [vmem:[#allocation5 + $0x9c8] sm:$0xff]  ;;  %v262_v38 = vld [vmem:[#allocation5 + $0x280] sm:$0xff] }
  0xe8   : > { %1065 = vmatpush.msrb.mxu2 %v369_v40  ;;  %930 = vmatmul.f32.vlgmr.msrb.gmra.mxu3 %v1617_v49  ;;  %v652_v58 = vadd.f32 %v651_v48, %v631_v47  ;;  %v406_v39 = vld [vmem:[#allocation5 + $0x700] sm:$0xff]  ;;  %v532_v40 = vld [vmem:[#allocation5 + $0xaf0] sm:$0xff]  ;;  %v477_v47 = vld [vmem:[#allocation5 + $0x938] sm:$0xff] }
  0xe9   : > { %1024 = vmatpush.msrb.mxu0 %v521_v41  ;;  %1074 = vmatpush.msrb.mxu3 %v612_v42  ;;  %v486_v41 = vld [vmem:[#allocation5 + $0x980] sm:$0xff]  ;;  %v253_v42 = vld [vmem:[#allocation5 + $0x238] sm:$0xff]  ;;  %v244_v48 = vld [vmem:[#allocation5 + $0x1f0] sm:$0xff] }
  0xea   : > { %1044 = vmatpush.msrb.mxu1 %v234_v43  ;;  %1066 = vmatpush.msrb.mxu2 %v360_v44  ;;  %v672_v1 = vadd.f32 %v671_v0, %v652_v58  ;;  %v397_v44 = vld [vmem:[#allocation5 + $0x6b8] sm:$0xff] }
  0xeb   : > { %1025 = vmatpush.msrb.mxu0 %v512_v45  ;;  %1075 = vmatpush.msrb.mxu3 %v603_v52  ;;  %v523_v45 = vld [vmem:[#allocation5 + $0xaa8] sm:$0xff]  ;;  %v388_v52 = vld [vmem:[#allocation5 + $0x670] sm:$0xff] }
  0xec   : > { %1045 = vmatpush.msrb.mxu1 %v225_v53  ;;  %1067 = vmatpush.msrb.mxu2 %v351_v54  ;;  %1154 = vst [vmem:[%s1625_s27] sm:$0xff] %v672_v1  ;;  %v514_v54 = vld [vmem:[#allocation5 + $0xa60] sm:$0xff]  ;;  %v487_v1 = vld [vmem:[#allocation5 + $0x988] sm:$0xff] }
  0xed   : > { %1026 = vmatpush.msrb.mxu0 %v503_v55  ;;  %1076 = vmatpush.msrb.mxu3 %v594_v56  ;;  %v235_v55 = vld [vmem:[#allocation5 + $0x1a8] sm:$0xff] }
  0xee   : > { %1046 = vmatpush.msrb.mxu1 %v216_v57  ;;  %1068 = vmatpush.msrb.mxu2 %v342_v59  ;;  %v379_v56 = vld [vmem:[#allocation5 + $0x628] sm:$0xff]  ;;  %v505_v57 = vld [vmem:[#allocation5 + $0xa18] sm:$0xff]  ;;  %v226_v59 = vld [vmem:[#allocation5 + $0x160] sm:$0xff] }
  0xef   : > { %1027 = vmatpush.msrb.mxu0 %v494_v60  ;;  %1077 = vmatpush.msrb.mxu3 %v585_v61  ;;  %v370_v60 = vld [vmem:[#allocation5 + $0x5e0] sm:$0xff]  ;;  %v496_v61 = vld [vmem:[#allocation5 + $0x9d0] sm:$0xff] }
  0xf0   : > { %1047 = vmatpush.msrb.mxu1 %v207_v62  ;;  %1069 = vmatpush.msrb.mxu2 %v333_v63  ;;  %v217_v62 = vld [vmem:[#allocation5 + $0x118] sm:$0xff] }
  0xf1   : > { %950 = vmatmul.f32.vlgmr.msra.gmra.mxu0 %v1622_v4  ;;  %990 = vmatmul.f32.vlgmr.msra.gmra.mxu2 %v1617_v49  ;;  %v361_v63 = vld [vmem:[#allocation5 + $0x598] sm:$0xff] }
  0xf2   : > { %1010 = vmatmul.f32.vlgmr.msra.gmra.mxu3 %v1622_v4  ;;  %1134 = vmatpush.msra.mxu2 %v613_v3 }
  0xf3   : > { %1078 = vmatpush.msrb.mxu3 %v576_v2  ;;  %1028 = vmatpush.msrb.mxu0 %v485_v5 }
  0xf4   : > { %1048 = vmatpush.msrb.mxu1 %v198_v6  ;;  %1135 = vmatpush.msra.mxu2 %v604_v8  ;;  %v208_v6 = vld [vmem:[#allocation5 + $0xd0] sm:$0xff] }
  0xf5   : > { %1079 = vmatpush.msrb.mxu3 %v567_v7  ;;  %1029 = vmatpush.msrb.mxu0 %v476_v9  ;;  %v352_v7 = vld [vmem:[#allocation5 + $0x550] sm:$0xff]  ;;  %v478_v9 = vld [vmem:[#allocation5 + $0x940] sm:$0xff] }
  0xf6   : > { %1049 = vmatpush.msrb.mxu1 %v189_v51  ;;  %1136 = vmatpush.msra.mxu2 %v595_v13  ;;  %v199_v51 = vld [vmem:[#allocation5 + $0x88] sm:$0xff]  ;;  %v190_v13 = vld [vmem:[#allocation5 + $0x40] sm:$0xff] }
  0xf7   : > { %970 = vmatmul.f32.vlgmr.msra.gmra.mxu1 %v1631_v15  ;;  %1080 = vmatpush.msrb.mxu3 %v558_v10 }
  0xf8   : > { %1094 = vmatpush.msra.mxu0 %v325_v11  ;;  %1114 = vmatpush.msra.mxu1 %v469_v12  ;;  %v343_v11 = vld [vmem:[#allocation5 + $0x508] sm:$0xff] }
  0xf9   : > { %1081 = vmatpush.msrb.mxu3 %v549_v14  ;;  %1137 = vmatpush.msra.mxu2 %v586_v16  ;;  %v334_v14 = vld [vmem:[#allocation5 + $0x4c0] sm:$0xff] }
  0xfa   : > { %1095 = vmatpush.msra.mxu0 %v316_v46  ;;  %1115 = vmatpush.msra.mxu1 %v460_v50 }
  0xfb   : > { %1030 = vmatmul.f32.vlgmr.msrb.gmra.mxu0 %v1631_v15  ;;  %1082 = vmatpush.msrb.mxu3 %v540_v17 }
  0xfc   : > { %1096 = vmatpush.msra.mxu0 %v307_v18  ;;  %1116 = vmatpush.msra.mxu1 %v451_v19 }
  0xfd   : > { %1138 = vmatpush.msra.mxu2 %v577_v20  ;;  %1083 = vmatpush.msrb.mxu3 %v531_v21  ;;  %v691_v43 = vpop.f32.mrf.mxu3 }
  0xfe   : > { %1097 = vmatpush.msra.mxu0 %v298_v22  ;;  %1117 = vmatpush.msra.mxu1 %v442_v23 }
  0xff   : > { %1139 = vmatpush.msra.mxu2 %v568_v24  ;;  %1084 = vmatpush.msrb.mxu3 %v522_v25 }
 0x100   : > { %1098 = vmatpush.msra.mxu0 %v289_v26  ;;  %1118 = vmatpush.msra.mxu1 %v433_v27 }
 0x101   : > { %1140 = vmatpush.msra.mxu2 %v559_v28  ;;  %1085 = vmatpush.msrb.mxu3 %v513_v29  ;;  %v711_v53 = vpop.f32.mrf.mxu0 }
 0x102   : > { %1099 = vmatpush.msra.mxu0 %v280_v30  ;;  %1119 = vmatpush.msra.mxu1 %v424_v31  ;;  %v712_v58 = vadd.f32 %v711_v53, %v691_v43 }
 0x103   : > { %1141 = vmatpush.msra.mxu2 %v550_v32  ;;  %1086 = vmatpush.msrb.mxu3 %v504_v33 }
 0x104   : > { %1100 = vmatpush.msra.mxu0 %v271_v34  ;;  %1120 = vmatpush.msra.mxu1 %v415_v35 }
 0x105   : > { %1142 = vmatpush.msra.mxu2 %v541_v36  ;;  %1087 = vmatpush.msrb.mxu3 %v495_v37 }
 0x106   : > { %1101 = vmatpush.msra.mxu0 %v262_v38  ;;  %1121 = vmatpush.msra.mxu1 %v406_v39 }
 0x107   : > { %1143 = vmatpush.msra.mxu2 %v532_v40  ;;  %1088 = vmatpush.msrb.mxu3 %v486_v41 }
 0x108   : > { %1102 = vmatpush.msra.mxu0 %v253_v42  ;;  %1122 = vmatpush.msra.mxu1 %v397_v44 }
 0x109   : > { %1144 = vmatpush.msra.mxu2 %v523_v45  ;;  %1089 = vmatpush.msrb.mxu3 %v477_v47  ;;  %v731_v0 = vpop.f32.mrf.mxu1  ;;  %v771_v5 = vpop.f32.mrf.mxu3 }
 0x10a   : > { %1070 = vmatmul.f32.vlgmr.msrb.gmra.mxu2 %v1622_v4  ;;  %1103 = vmatpush.msra.mxu0 %v244_v48  ;;  %v732_v2 = vadd.f32 %v731_v0, %v712_v58 }
 0x10b   : > { %1123 = vmatpush.msra.mxu1 %v388_v52  ;;  %1145 = vmatpush.msra.mxu2 %v514_v54 }
 0x10c   : > { %1090 = vmatmul.f32.vlgmr.msrb.gmra.mxu3 %v1631_v15  ;;  %1104 = vmatpush.msra.mxu0 %v235_v55  ;;  %1155 = vst [vmem:[%s1625_s27 + $0x8] sm:$0xff] %v732_v2 }
 0x10d   : > { %1124 = vmatpush.msra.mxu1 %v379_v56  ;;  %1146 = vmatpush.msra.mxu2 %v505_v57 }
 0x10e   : > { %1050 = vmatmul.f32.vlgmr.msrb.gmra.mxu1 %v1617_v49  ;;  %1105 = vmatpush.msra.mxu0 %v226_v59 }
 0x10f   : > { %1125 = vmatpush.msra.mxu1 %v370_v60  ;;  %1147 = vmatpush.msra.mxu2 %v496_v61 }
 0x110   : > { %v751_v3 = vpop.f32.mrf.mxu2  ;;  %1106 = vmatpush.msra.mxu0 %v217_v62 }
 0x111   : > { %v772_v8 = vadd.f32 %v771_v5, %v751_v3  ;;  %1126 = vmatpush.msra.mxu1 %v361_v63  ;;  %1148 = vmatpush.msra.mxu2 %v487_v1 }
 0x112   : > { %v791_v10 = vpop.f32.mrf.mxu0  ;;  %1107 = vmatpush.msra.mxu0 %v208_v6 }
 0x113   : > { %1127 = vmatpush.msra.mxu1 %v352_v7  ;;  %v792_v12 = vadd.f32 %v791_v10, %v772_v8  ;;  %1149 = vmatpush.msra.mxu2 %v478_v9 }
 0x114   : > { %1150 = vmatmul.f32.vlgmr.msra.gmra.mxu2 %v1631_v15  ;;  %1108 = vmatpush.msra.mxu0 %v199_v51 }
 0x115   : > { %1156 = vst [vmem:[%s1625_s27 + $0x10] sm:$0xff] %v792_v12  ;;  %1128 = vmatpush.msra.mxu1 %v343_v11 }
 0x116   : > { %1109 = vmatpush.msra.mxu0 %v190_v13 }
 0x117   : > { %1129 = vmatpush.msra.mxu1 %v334_v14  ;;  %1110 = vmatmul.f32.vlgmr.msra.gmra.mxu0 %v1617_v49 }
 0x118   : > { %1130 = vmatmul.f32.vlgmr.msra.gmra.mxu1 %v1622_v4 }
 0x12c   : > { %v831_v46 = vpop.f32.mrf.mxu2 }
 0x12f   : > { %v811_v50 = vpop.f32.mrf.mxu1 }
 0x130   : > { %v832_v16 = vadd.f32 %v831_v46, %v811_v50  ;;  %v851_v17 = vpop.f32.mrf.mxu3 }
 0x132   : > { %v852_v18 = vadd.f32 %v851_v17, %v832_v16 }
 0x134   : > { %1157 = vst [vmem:[%s1625_s27 + $0x18] sm:$0xff] %v852_v18 }
 0x150   : > { %v871_v19 = vpop.f32.mrf.mxu0 }
 0x151   : > { %v891_v15 = vpop.f32.mrf.mxu1 }
 0x152   : > { %v892_v20 = vadd.f32 %v891_v15, %v871_v19  ;;  %v911_v21 = vpop.f32.mrf.mxu2 }
 0x154   : > { %v912_v22 = vadd.f32 %v911_v21, %v892_v20 }
 0x156   : > { %1158 = vst [vmem:[%s1625_s27 + $0x20] sm:$0xff] %v912_v22 }
 0x16b   : > { %v931_v23 = vpop.f32.mrf.mxu3 }
 0x16e   : > { %v951_v24 = vpop.f32.mrf.mxu0 }
 0x16f   : > { %v952_v49 = vadd.f32 %v951_v24, %v931_v23 }
 0x174   : > { %v971_v4 = vpop.f32.mrf.mxu1  ;;  %v991_v26 = vpop.f32.mrf.mxu2 }
 0x175   : > { %v972_v25 = vadd.f32 %v971_v4, %v952_v49  ;;  %v1011_v27 = vpop.f32.mrf.mxu3 }
 0x176   : > { %v1012_v28 = vadd.f32 %v1011_v27, %v991_v26 }
 0x177   : > { %1159 = vst [vmem:[%s1625_s27 + $0x28] sm:$0xff] %v972_v25 }
 0x178   : > { %v1031_v29 = vpop.f32.mrf.mxu0 }
 0x179   : > { %v1032_v30 = vadd.f32 %v1031_v29, %v1012_v28 }
 0x17b   : > { %1160 = vst [vmem:[%s1625_s27 + $0x30] sm:$0xff] %v1032_v30 }
 0x18b   : > { %v1051_v31 = vpop.f32.mrf.mxu1 }
 0x18d   : > { %v1071_v32 = vpop.f32.mrf.mxu2 }
 0x18e   : > { %v1072_v33 = vadd.f32 %v1071_v32, %v1051_v31 }
 0x18f   : > { %v1091_v34 = vpop.f32.mrf.mxu3 }
 0x190   : > { %v1092_v35 = vadd.f32 %v1091_v34, %v1072_v33 }
 0x192   : > { %1161 = vst [vmem:[%s1625_s27 + $0x38] sm:$0xff] %v1092_v35 }
 0x194   : > { %v1111_v36 = vpop.f32.mrf.mxu0 }
 0x195   : > { %v1131_v37 = vpop.f32.mrf.mxu1 }
 0x196   : > { %v1132_v38 = vadd.f32 %v1131_v37, %v1111_v36 }
 0x197   : > { %v1151_v39 = vpop.f32.mrf.mxu2 }
 0x198   : > { %v1152_v40 = vadd.f32 %v1151_v39, %v1132_v38 }
 0x19a   : > { %1162 = vst [vmem:[%s1625_s27 + $0x40] sm:$0xff] %v1152_v40 }
 0x19b   : > { %1424 = shalt.err (!%p1421_p9)
}
 0x19c   : > { %1281 = dma.vmem_to_hbm [thread:$0]  (%p1547_p0), %s1178_s15, 1152, %s1180_s18, %s1164_s19  }
 0x19d PF: > { %s1191_s29 = sand.u32 1, %s1455_s9   ;;  %p1691_p10 = scmp.ge.s32.totalorder %s1467_s12, 2 }
 0x19e   : > { %s1192_s3 = scalar_lea.sflag [#allocation4], %s1191_s29 }
 0x19f   : > { %p1292_p11 = pnand %p1691_p10, %p1553_p6 }
 0x1a1   : > { %p1293_p12 = pneg %p1292_p11 }
 0x1a3   : > { %1450 = dma.done.wait (%p1293_p12), %s1192_s3, 1152  }
 0x1a4   : > { %1452 = vsyncadd (%p1293_p12), %s1192_s3, 4294966144  ;;  %p16_p2 = scmp.ge.s32.totalorder %s1527_s23, 4   ;;  %s1692_s9 = smov %s1459_s10 }
 0x1a5   : > { %s1693_s10 = smov %s1463_s11  ;;  %s1694_s11 = smov %s1539_s26 }
 0x1a6   : > { %s1695_s12 = smov %s1527_s23  ;;  %18 = sbr.rel (!%p16_p2) target bundleno = 6 (0x6), region = 77 }
 0x1ab   :  { %1198 = vsyncpa [#allocation3], 1 }
 0x1ac   :  { %1200 = vsyncpa [#allocation3 + $0x1], 1 }
 0x1ad   :  { %1201 = vsyncpa [#allocation6], 1 }
 0x1ae   :  { %1202 = vsyncpa [#allocation4], 1 }
 0x1af   :  { %1204 = vsyncpa [#allocation4 + $0x1], 1 }

</bundles_post_ra>
